<compile_context>
chip_gen: v5e
topology: v5e:2x2
jax: 0.10.0
libtpu: 0.0.40
codegen_flags: <defaults>
</compile_context>

<pallas_src>
import functools
import math

import jax
import jax.numpy as jnp
from jax import lax
from jax.experimental import pallas as pl
from jax.experimental.pallas import tpu as pltpu

LANE = 128  # TPU vreg lane width; the channel dim is padded to a multiple of it.


def minimum_required_blocks(window, dilation_base, kernel_size):
    return math.ceil(
        math.log((window - 1) * (dilation_base - 1) / ((kernel_size - 1) * 2) + 1,
                 dilation_base))


def _round_up(x, m):
    return ((x + m - 1) // m) * m


def _tpu_hardware_info():
    """Best-effort query of VMEM capacity and TensorCore count.

    Falls back to conservative defaults (64 MiB VMEM -- v7x physical -- and a
    single TensorCore, i.e. v5e/v6e behaviour) if the query is unavailable.
    """
    vmem_bytes = 64 << 20
    num_cores = 1
    try:
        info = pltpu.get_tpu_info()
        v = getattr(info, "vmem_capacity_bytes", None)
        if isinstance(v, (int, float)) and v > 0:
            vmem_bytes = int(v)
        for attr in ("num_cores", "core_count", "num_tensorcores",
                     "tensorcores_per_chip"):
            c = getattr(info, attr, None)
            if isinstance(c, (int, float)) and c >= 1:
                num_cores = int(c)
                break
    except Exception:
        pass
    return vmem_bytes, num_cores


def _tcn_fused_kernel(x_ref, w1_ref, w2_ref, wr_ref, vec_ref, out_ref, xpad_ref, *,
                      layer_cfg, kernel_size, seq_len, out_len, batch_tile,
                      features):
    """All residual blocks fused; one grid step processes `batch_tile` sequences.

    x_ref   : (M, F)  f32   raw, UNPADDED input rows (M = batch_tile * seq_len).
    w1_ref  : (n_layers, K*C, C)     bf16  conv1 taps stacked along the
                                           contraction dim, BN1 scale folded in.
    w2_ref  : (n_layers, (K+1)*C, C) bf16  conv2 taps (+ 1x1 residual projection
                                           as block K, for layers where it can
                                           legally be fused).
    wr_ref  : (n_res, C, C)          bf16  1x1 projections that could NOT be
                                           fused (projection followed by ReLU).
    vec_ref : (n_layers, 3, C)       f32   rows: o1, o2 (conv bias + BN offset,
                                           + proj bias when fused), proj bias.
    out_ref : (batch_tile*out_len, C) f32  last `out_len` timesteps / sequence.
    xpad_ref: (M, C) f32  VMEM scratch      lane-dense zero-padded input slab.
    """
    K, L = kernel_size, seq_len
    M, C = xpad_ref.shape
    KC = K * C

    # Zero-pad the raw (M, F) input to the lane-dense (M, 128) slab on-chip
    # (no padded copy of the input ever written to / re-read from HBM).
    xpad_ref[...] = jnp.zeros_like(xpad_ref)
    xpad_ref[:, 0:features] = x_ref[...].astype(jnp.float32)
    a = xpad_ref[...]

    # Within-sequence time index as a single (M, 1) column; the per-tap causal
    # select broadcasts it across the 128 lanes.
    t_col = lax.broadcasted_iota(jnp.int32, (M, 1), 0) % L

    def tap_stack(src_f32, shifts_and_masks, extra_f32=None):
        # Lane-concatenate the K shifted/masked taps (each a full 128-lane slab,
        # so the concat is aligned/cheap) into one (M, K*C [+C]) matmul operand.
        pieces = []
        for shift, mask in shifts_and_masks:
            if shift == 0:
                pieces.append(src_f32)
            elif shift >= L:
                pieces.append(jnp.zeros_like(src_f32))   # tap only sees causal pad
            else:
                # pltpu.roll uses jnp.roll semantics: out[i] = in[i - shift].
                # The mask (t < shift -> 0) both enforces causality and stops the
                # rotation from leaking rows across sequence boundaries / the
                # wrap-around of the flattened block; the wrapper asserts every
                # grid tile starts exactly on a sequence boundary.
                xs = pltpu.roll(src_f32, shift, axis=0)
                pieces.append(jnp.where(mask, xs, 0.0))
        if extra_f32 is not None:
            pieces.append(extra_f32)
        return jnp.concatenate(pieces, axis=1).astype(jnp.bfloat16)

    for layer, (dilation, fused_res, res_idx, final_relu) in enumerate(layer_cfg):
        o1 = vec_ref[layer, 0:1, :]                      # (1, C)
        o2 = vec_ref[layer, 1:2, :]

        # Per-shift causal masks: computed once per layer, shared by conv1/conv2
        # (same dilation => same shifts).
        shifts_and_masks = []
        for t in range(K):
            shift = (K - 1 - t) * dilation               # static per tap
            mask = (t_col >= shift) if 0 < shift < L else None
            shifts_and_masks.append((shift, mask))

        # ---- conv1 (+ folded BN1/bias) + ReLU: one (M,K*C)x(K*C,C) MXU pass ----
        x1 = tap_stack(a, shifts_and_masks)
        h = jnp.dot(x1, w1_ref[layer], preferred_element_type=jnp.float32)
        h = jnp.maximum(h + o1, 0.0)
        # TODO(synk): nn.Dropout omitted (p=0 default / eval mode -> identity).

        # ---- conv2 (+ folded BN2/bias) [+ fused 1x1 residual projection] ----
        if fused_res:
            # Last block: no ReLU between BN2 and the residual add, so the 1x1
            # projection rides in the same dot ((K+1)*C-deep contraction) and
            # its bias is folded into o2 -> the projection is effectively free.
            x2 = tap_stack(h, shifts_and_masks, extra_f32=a)
            a = jnp.dot(x2, w2_ref[layer], preferred_element_type=jnp.float32) + o2
        else:
            x2 = tap_stack(h, shifts_and_masks)
            y = jnp.dot(x2, w2_ref[layer, 0:KC, :],
                        preferred_element_type=jnp.float32) + o2
            if final_relu:
                y = jnp.maximum(y, 0.0)
            if res_idx is None:
                a = y + a                                 # identity residual
            else:
                # Projection followed by a ReLU'd main path: cannot be fused into
                # conv2 without breaking ReLU placement -> keep a separate dot.
                br = vec_ref[layer, 2:3, :]
                a = y + jnp.dot(a.astype(jnp.bfloat16), wr_ref[res_idx],
                                preferred_element_type=jnp.float32) + br
        # Channels beyond each layer's true width stay exactly zero throughout.

    # Shrunk writeback: only the last `out_len` timesteps of each sequence are
    # consumed downstream; keep the 128-lane last dim for unmasked stores.
    for b in range(batch_tile):
        out_ref[b * out_len:(b + 1) * out_len, :] = a[
            b * L + (L - out_len): b * L + L, :].astype(out_ref.dtype)


def tcn_fused_forward(x_flat, w1_all, w2_all, wr_all, vec_all, *, layer_cfg,
                      kernel_size, seq_len, out_len, batch_tile, features,
                      vmem_limit_bytes):
    rows, feat = x_flat.shape
    assert feat == features
    C = w1_all.shape[-1]
    M = batch_tile * seq_len
    assert rows % M == 0, "every grid tile must start at a sequence boundary"
    n_tiles = rows // M
    n_seq = rows // seq_len
    K = kernel_size

    kernel = functools.partial(
        _tcn_fused_kernel, layer_cfg=layer_cfg, kernel_size=kernel_size,
        seq_len=seq_len, out_len=out_len, batch_tile=batch_tile,
        features=features)

    # Advisory cost estimate so XLA schedules the tiny prep/epilogue ops sensibly
    # around the long fused kernel.
    flops = 0
    for _, fused_res, res_idx, _ in layer_cfg:
        taps2 = (K + 1) if fused_res else K
        proj = 0 if res_idx is None else 1
        flops += 2 * rows * C * C * (K + taps2 + proj)
    bytes_accessed = (x_flat.size * x_flat.dtype.itemsize
                      + n_seq * out_len * C * 4
                      + (w1_all.size + w2_all.size + wr_all.size) * 2
                      + vec_all.size * 4)

    return pl.pallas_call(
        kernel,
        out_shape=jax.ShapeDtypeStruct((n_seq * out_len, C), jnp.float32),
        grid=(n_tiles,),
        in_specs=[
            pl.BlockSpec((M, features), lambda i: (i, 0)),
            # Weight stacks use constant index maps -> fetched once, kept in VMEM.
            # TODO(synk): for very deep TCNs single-buffer these (pipeline_mode=
            # pl.Buffered(1) or a one-shot DMA into scratch) to halve weight VMEM.
            pl.BlockSpec(w1_all.shape, lambda i: (0, 0, 0)),
            pl.BlockSpec(w2_all.shape, lambda i: (0, 0, 0)),
            pl.BlockSpec(wr_all.shape, lambda i: (0, 0, 0)),
            pl.BlockSpec(vec_all.shape, lambda i: (0, 0, 0)),
        ],
        out_specs=pl.BlockSpec((batch_tile * out_len, C), lambda i: (i, 0)),
        scratch_shapes=[pltpu.VMEM((M, C), jnp.float32)],
        compiler_params=pltpu.CompilerParams(
            dimension_semantics=("parallel",),
            vmem_limit_bytes=int(vmem_limit_bytes)),
        cost_estimate=pl.CostEstimate(flops=int(flops), transcendentals=0,
                                      bytes_accessed=int(bytes_accessed)),
    )(x_flat, w1_all, w2_all, wr_all, vec_all)


def init_residual_block(key, in_c, out_c, kernel_size, is_last_block):
    """Deterministic synthetic parameters matching ResidualBlock.__init__ (eval)."""
    hidden = in_c if is_last_block else out_c
    k1, k2, k3, k4, k5, k6 = jax.random.split(key, 6)
    eps = 1e-5

    # conv weights ~ N(0, 0.01) as in ResidualBlock.init_weights(); small biases.
    w1 = 0.01 * jax.random.normal(k1, (kernel_size, in_c, hidden), jnp.float32)
    b1 = 0.1 * jax.random.normal(k2, (hidden,), jnp.float32)
    w2 = 0.01 * jax.random.normal(k3, (kernel_size, hidden, out_c), jnp.float32)
    b2 = 0.1 * jax.random.normal(k4, (out_c,), jnp.float32)

    # BatchNorm1d in eval mode: gamma=1, beta=0, running_mean=0, running_var=1.
    g1, be1 = jnp.ones((hidden,)), jnp.zeros((hidden,))
    m1, v1 = jnp.zeros((hidden,)), jnp.ones((hidden,))
    g2, be2 = jnp.ones((out_c,)), jnp.zeros((out_c,))
    m2, v2 = jnp.zeros((out_c,)), jnp.ones((out_c,))

    # Fold conv bias + BN into per-channel scale/offset: bn(y + b) = y*s + (b*s + off)
    s1 = g1 / jnp.sqrt(v1 + eps)
    o1 = (be1 - m1 * s1) + b1 * s1
    s2 = g2 / jnp.sqrt(v2 + eps)
    o2 = (be2 - m2 * s2) + b2 * s2

    if in_c != out_c:
        wr = 0.01 * jax.random.normal(k5, (in_c, out_c), jnp.float32)
        br = 0.1 * jax.random.normal(k6, (out_c,), jnp.float32)
    else:
        wr, br = None, None               # identity residual: no projection weight
    return (w1, s1, o1, w2, s2, o2, wr, br)


class TCNPallas:
    def __init__(self, window, horizon, features, kernel_size=3, dilation_base=2,
                 dropout=0.0, hidden_channels_factor=1, key=None):
        # TODO(synk): dropout > 0 (training mode) is not implemented; the fused
        # kernel matches the PyTorch TCN in eval mode / p=0 only.
        assert dropout == 0.0, "fused kernel implements eval-mode / p=0 forward only"
        if key is None:
            key = jax.random.PRNGKey(0)
        self.window = window
        self.horizon = horizon
        self.features = features
        self.kernel_size = kernel_size
        self.dilation_base = dilation_base
        self.hidden_channels = features * horizon * hidden_channels_factor
        self.n_layers = minimum_required_blocks(window, dilation_base, kernel_size)

        # Lane-dense padded channel width shared by every layer.
        # TODO(synk): for genuinely wide TCNs (C_true > 128) round toward 256 on
        # v6e/v7x to fill the 2x256^2 MXU; 128 is the right floor at these sizes.
        self.C = _round_up(max(self.features, self.hidden_channels, 1), LANE)

        # Generation-aware knobs (VMEM budget / TensorCore count), with safe
        # fallbacks if the query is unavailable.
        self.vmem_capacity, self.num_cores = _tpu_hardware_info()
        self.vmem_limit = max(32 << 20, min(self.vmem_capacity * 3 // 4, 100 << 20))

        # Per-layer (unpadded, f32) parameters — also used by the pure-JAX reference.
        self.blocks = []
        keys = jax.random.split(key, self.n_layers)
        for i in range(self.n_layers):
            is_last_block = False
            if i == 0:
                in_c, out_c = self.features, self.hidden_channels
            elif i == self.n_layers - 1:
                in_c, out_c = self.hidden_channels, self.features
                is_last_block = True
            else:
                in_c, out_c = self.hidden_channels, self.hidden_channels
            params = init_residual_block(keys[i], in_c, out_c, kernel_size,
                                         is_last_block)
            dilation = dilation_base ** i
            self.blocks.append((params, dilation, not is_last_block))

        # ---- Pack everything the kernel needs into a few stacked arrays ----
        #  * conv taps stacked along the contraction dim (K*C rows), BN scale
        #    folded into the weight columns -> one dot per conv in-kernel.
        #  * last-block 1x1 projection stacked under the conv2 taps (fusable
        #    because there is no ReLU before its residual add), bias folded
        #    into the additive offset.
        C, K = self.C, kernel_size
        w1_l, w2_l, wr_l, vec_l, cfg = [], [], [], [], []
        for (w1, s1, o1, w2, s2, o2, wr, br), dilation, final_relu in self.blocks:
            in_c, hid_c = w1.shape[1], w1.shape[2]
            out_c = w2.shape[2]
            w1f = w1 * s1[None, None, :]          # fold eval-mode BN scale
            w2f = w2 * s2[None, None, :]
            w1s = jnp.zeros((K * C, C), jnp.float32)
            w2s = jnp.zeros(((K + 1) * C, C), jnp.float32)
            for t in range(K):
                w1s = w1s.at[t * C:t * C + in_c, :hid_c].set(w1f[t])
                w2s = w2s.at[t * C:t * C + hid_c, :out_c].set(w2f[t])
            vec = jnp.zeros((3, C), jnp.float32)
            vec = vec.at[0, :hid_c].set(o1)
            o2_eff = o2
            fused_res, res_idx = False, None
            if wr is not None:
                if not final_relu:
                    # Fusable (last block): projection under the conv2 taps,
                    # projection bias folded into o2.
                    fused_res = True
                    w2s = w2s.at[K * C:K * C + in_c, :out_c].set(wr)
                    o2_eff = o2 + br
                else:
                    wr_l.append(jnp.zeros((C, C), jnp.float32)
                                .at[:in_c, :out_c].set(wr))
                    res_idx = len(wr_l) - 1
                    vec = vec.at[2, :out_c].set(br)
            vec = vec.at[1, :out_c].set(o2_eff)
            w1_l.append(w1s)
            w2_l.append(w2s)
            vec_l.append(vec)
            cfg.append((int(dilation), fused_res, res_idx, bool(final_relu)))

        self.w1_all = jnp.stack(w1_l).astype(jnp.bfloat16)   # (n_layers, K*C, C)
        self.w2_all = jnp.stack(w2_l).astype(jnp.bfloat16)   # (n_layers, (K+1)*C, C)
        self.wr_all = (jnp.stack(wr_l).astype(jnp.bfloat16) if wr_l
                       else jnp.zeros((1, C, C), jnp.bfloat16))
        self.vec_all = jnp.stack(vec_l)                       # (n_layers, 3, C)
        self.layer_cfg = tuple(cfg)

    def _choose_batch_tile(self, B, L, out_len):
        """Generation/VMEM-aware batch tiling.

        Single big block on 1-TensorCore parts (v5e/v6e) unless VMEM forces a
        split; on multi-TC parts (v7x) split across cores only while each tile
        keeps a healthy matmul M (>= 512 rows).  Every tile starts exactly on a
        sequence boundary (required by the roll+mask causal shift).
        """
        C, K = self.C, self.kernel_size
        weight_bytes = ((self.w1_all.size + self.w2_all.size + self.wr_all.size) * 2
                        + self.vec_all.size * 4)

        def tile_bytes(bt):
            M = bt * L
            slab = M * C * 4
            act = slab * 7 + M * (K + 1) * C * 2      # live f32 temps + bf16 tap stack
            io = 2 * M * self.features * 4 + 2 * bt * out_len * C * 4
            return act + io + 2 * weight_bytes

        def aligned(bt):
            return bt == B or ((bt * L) % 8 == 0 and (bt * out_len) % 8 == 0)

        budget = int(0.8 * self.vmem_limit)
        cands = [bt for bt in range(B, 0, -1) if B % bt == 0 and aligned(bt)]
        bt = next((b for b in cands if tile_bytes(b) <= budget), cands[-1])

        if bt == B and self.num_cores >= 2:
            split = min(self.num_cores, 2)
            if B % split == 0:
                b2 = B // split
                if b2 < B and aligned(b2) and b2 * L >= 512:
                    bt = b2
        return bt

    def __call__(self, x_ncl):
        B, F, L = x_ncl.shape
        assert F == self.features and L == self.window, (x_ncl.shape,)
        # When F == 1 only the last `horizon` timesteps survive the torch
        # forward's squeeze(1) + [:, -horizon:] -> shrink the kernel writeback.
        # When F > 1 torch slices the *channel* dim, so bring back all L steps.
        out_len = self.horizon if F == 1 else L
        assert 0 < out_len <= L

        # Tiny layout prep: NCL -> NLC, fold batch into the matmul M dim.  The
        # channel zero-padding to 128 lanes happens inside the kernel (VMEM), so
        # no padded copy of the input ever touches HBM.
        x_flat = jnp.transpose(x_ncl, (0, 2, 1)).astype(jnp.float32).reshape(B * L, F)

        bt = self._choose_batch_tile(B, L, out_len)
        assert B % bt == 0                       # tiles start at sequence boundaries

        out = tcn_fused_forward(
            x_flat, self.w1_all, self.w2_all, self.wr_all, self.vec_all,
            layer_cfg=self.layer_cfg, kernel_size=self.kernel_size,
            seq_len=L, out_len=out_len, batch_tile=bt, features=F,
            vmem_limit_bytes=self.vmem_limit)

        y = out.reshape(B, out_len, self.C)[:, :, :F]   # drop channel padding
        y_ncl = jnp.transpose(y, (0, 2, 1))             # (B, F, out_len)
        if y_ncl.shape[1] == 1:                         # mirrors torch .squeeze(1)
            return y_ncl[:, 0, :]                       # (B, horizon)
        return y_ncl[:, -self.horizon:]                 # torch slices dim 1 if F > 1


def tcn_reference(x_ncl, model):
    """Pure-JAX reference of the torch TCN forward (eval mode).  Mirrors the
    kernel's bf16 rounding (BN scale folded into the conv weights before the
    bf16 cast) so the comparison is tight."""
    B, F, L = x_ncl.shape

    def bf(z):
        return z.astype(jnp.bfloat16).astype(jnp.float32)

    a = jnp.transpose(x_ncl, (0, 2, 1)).astype(jnp.float32)   # (B, L, Cin)
    for (w1, s1, o1, w2, s2, o2, wr, br), dilation, final_relu in model.blocks:
        K = w1.shape[0]

        def conv(x, w, s):
            pad = (K - 1) * dilation
            xp = jnp.pad(x, ((0, 0), (pad, 0), (0, 0)))
            out = 0.0
            for t in range(K):
                sl = xp[:, t * dilation:t * dilation + L, :]
                out = out + jnp.einsum('blc,co->blo', bf(sl), bf(w[t] * s),
                                       precision=lax.Precision.HIGHEST)
            return out

        h = jnp.maximum(conv(a, w1, s1) + o1, 0.0)
        y = conv(h, w2, s2) + o2
        if final_relu:
            y = jnp.maximum(y, 0.0)
        if wr is None:
            a = y + a
        else:
            a = y + jnp.einsum('blc,co->blo', bf(a), bf(wr),
                               precision=lax.Precision.HIGHEST) + br
    y_ncl = jnp.transpose(a, (0, 2, 1))
    if y_ncl.shape[1] == 1:
        y_ncl = y_ncl[:, 0, :]
    return y_ncl[:, -model.horizon:]


if __name__ == "__main__":
    window, horizon, features, batch = 16, 4, 1, 2

    key = jax.random.PRNGKey(0)
    kx, kp = jax.random.split(key)
    # PyTorch-style NCL input: (batch, features, window)
    x = jax.random.normal(kx, (batch, features, window), jnp.float32)

    model = TCNPallas(window, horizon, features, key=kp)
    out = jax.block_until_ready(model(x))

    assert out.shape == (batch, horizon), out.shape
    assert bool(jnp.all(jnp.isfinite(out)))

    ref = jax.block_until_ready(tcn_reference(x, model))
    max_err = float(jnp.max(jnp.abs(out - ref)))
    assert max_err < 5e-3, f"mismatch vs reference: {max_err}"

    print("KERNEL_OK")
</pallas_src>

<mosaic_0001>
module attributes {stable_mosaic.version = 11 : i64} {
  func.func @_tcn_fused_kernel(%arg0: i32, %arg1: memref<32x1xf32, #tpu.memory_space<vmem>>, %arg2: memref<3x384x128xbf16, #tpu.memory_space<vmem>>, %arg3: memref<3x512x128xbf16, #tpu.memory_space<vmem>>, %arg4: memref<1x128x128xbf16, #tpu.memory_space<vmem>>, %arg5: memref<3x3x128xf32, #tpu.memory_space<vmem>>, %arg6: memref<8x128xf32, #tpu.memory_space<vmem>>, %arg7: memref<32x128xf32, #tpu.memory_space<vmem>>) attributes {dimension_semantics = [#tpu.dimension_semantics<parallel>], iteration_bounds = array<i64: 1>, scalar_prefetch = 0 : i64, scratch_operands = 1 : i64, tpu.core_type = #tpu.core_type<tc>, window_params = [{transform_indices = @transform_0, window_bounds = array<i64: 32, 1>}, {pipeline_mode = #tpu.pipeline_mode<synchronous>, transform_indices = @transform_1, window_bounds = array<i64: 3, 384, 128>}, {pipeline_mode = #tpu.pipeline_mode<synchronous>, transform_indices = @transform_2, window_bounds = array<i64: 3, 512, 128>}, {pipeline_mode = #tpu.pipeline_mode<synchronous>, transform_indices = @transform_3, window_bounds = array<i64: 1, 128, 128>}, {pipeline_mode = #tpu.pipeline_mode<synchronous>, transform_indices = @transform_4, window_bounds = array<i64: 3, 3, 128>}, {transform_indices = @transform_5, window_bounds = array<i64: 8, 128>}]} {
    %cst = arith.constant 0.000000e+00 : f32
    %0 = vector.broadcast %cst : f32 to vector<32x128xf32>
    %c0 = arith.constant 0 : index
    %c0_0 = arith.constant 0 : index
    %1 = vector.load %arg7[%c0, %c0_0] : memref<32x128xf32, #tpu.memory_space<vmem>>, vector<32x128xf32>
    tpu.vector_store %arg7[%c0, %c0_0], %0 {strides = array<i32>} : memref<32x128xf32, #tpu.memory_space<vmem>>, vector<32x128xf32>,
    %c0_1 = arith.constant 0 : index
    %c0_2 = arith.constant 0 : index
    %2 = vector.load %arg1[%c0_1, %c0_2] : memref<32x1xf32, #tpu.memory_space<vmem>>, vector<32x1xf32>
    %c0_3 = arith.constant 0 : index
    %c0_4 = arith.constant 0 : index
    %3 = vector.load %arg7[%c0_3, %c0_4] : memref<32x128xf32, #tpu.memory_space<vmem>>, vector<32x1xf32>
    tpu.vector_store %arg7[%c0_3, %c0_4], %2 {strides = array<i32>} : memref<32x128xf32, #tpu.memory_space<vmem>>, vector<32x1xf32>,
    %c0_5 = arith.constant 0 : index
    %c0_6 = arith.constant 0 : index
    %4 = vector.load %arg7[%c0_5, %c0_6] : memref<32x128xf32, #tpu.memory_space<vmem>>, vector<32x128xf32>
    %5 = tpu.iota {dimensions = array<i32: 0>} : vector<32x1xi32>
    %c16_i32 = arith.constant 16 : i32
    %c0_i32 = arith.constant 0 : i32
    %6 = arith.cmpi eq, %c16_i32, %c0_i32 : i32
    %c1_i32 = arith.constant 1 : i32
    %7 = arith.select %6, %c1_i32, %c16_i32 : i32
    %8 = vector.broadcast %7 : i32 to vector<32x1xi32>
    %9 = arith.remsi %5, %8 : vector<32x1xi32>
    %c0_i32_7 = arith.constant 0 : i32
    %10 = vector.broadcast %c0_i32_7 : i32 to vector<32x1xi32>
    %11 = arith.cmpi ne, %9, %10 : vector<32x1xi32>
    %c0_i32_8 = arith.constant 0 : i32
    %12 = vector.broadcast %c0_i32_8 : i32 to vector<32x1xi32>
    %13 = arith.cmpi slt, %9, %12 : vector<32x1xi32>
    %c0_i32_9 = arith.constant 0 : i32
    %14 = arith.cmpi slt, %7, %c0_i32_9 : i32
    %15 = vector.broadcast %14 : i1 to vector<32x1xi1>
    %16 = vector.broadcast %15 : vector<32x1xi1> to vector<32x1xi1>
    %17 = arith.xori %13, %16 : vector<32x1xi1>
    %18 = arith.andi %17, %11 : vector<32x1xi1>
    %19 = vector.broadcast %7 : i32 to vector<32x1xi32>
    %20 = arith.addi %9, %19 : vector<32x1xi32>
    %21 = arith.select %18, %20, %9 : vector<32x1xi1>, vector<32x1xi32>
    %c0_10 = arith.constant 0 : index
    %c0_11 = arith.constant 0 : index
    %c0_12 = arith.constant 0 : index
    %22 = vector.load %arg5[%c0_10, %c0_11, %c0_12] : memref<3x3x128xf32, #tpu.memory_space<vmem>>, vector<1x1x128xf32>
    %23 = vector.shape_cast %22 : vector<1x1x128xf32> to vector<1x128xf32>
    %c0_13 = arith.constant 0 : index
    %c1 = arith.constant 1 : index
    %c0_14 = arith.constant 0 : index
    %24 = vector.load %arg5[%c0_13, %c1, %c0_14] : memref<3x3x128xf32, #tpu.memory_space<vmem>>, vector<1x1x128xf32>
    %25 = vector.shape_cast %24 : vector<1x1x128xf32> to vector<1x128xf32>
    %c2_i32 = arith.constant 2 : i32
    %26 = vector.broadcast %c2_i32 : i32 to vector<32x1xi32>
    %27 = arith.cmpi sge, %21, %26 : vector<32x1xi32>
    %c1_i32_15 = arith.constant 1 : i32
    %28 = vector.broadcast %c1_i32_15 : i32 to vector<32x1xi32>
    %29 = arith.cmpi sge, %21, %28 : vector<32x1xi32>
    %c2_i32_16 = arith.constant 2 : i32
    %30 = tpu.dynamic_rotate %4 by %c2_i32_16 dim 0 : vector<32x128xf32>, i32 -> vector<32x128xf32>
    %cst_17 = arith.constant 0.000000e+00 : f32
    %31 = vector.shape_cast %27 : vector<32x1xi1> to vector<32x1xi1>
    %32 = vector.broadcast %31 : vector<32x1xi1> to vector<32x128xi1>
    %33 = vector.broadcast %cst_17 : f32 to vector<32x128xf32>
    %34 = arith.select %32, %30, %33 : vector<32x128xi1>, vector<32x128xf32>
    %c1_i32_18 = arith.constant 1 : i32
    %35 = tpu.dynamic_rotate %4 by %c1_i32_18 dim 0 : vector<32x128xf32>, i32 -> vector<32x128xf32>
    %cst_19 = arith.constant 0.000000e+00 : f32
    %36 = vector.shape_cast %29 : vector<32x1xi1> to vector<32x1xi1>
    %37 = vector.broadcast %36 : vector<32x1xi1> to vector<32x128xi1>
    %38 = vector.broadcast %cst_19 : f32 to vector<32x128xf32>
    %39 = arith.select %37, %35, %38 : vector<32x128xi1>, vector<32x128xf32>
    %40 = tpu.concatenate %34, %39, %4 in 1 : vector<32x128xf32>, vector<32x128xf32>, vector<32x128xf32> -> vector<32x384xf32>
    %41 = arith.truncf %40 : vector<32x384xf32> to vector<32x384xbf16>
    %c0_20 = arith.constant 0 : index
    %c0_21 = arith.constant 0 : index
    %c0_22 = arith.constant 0 : index
    %42 = vector.load %arg2[%c0_20, %c0_21, %c0_22] : memref<3x384x128xbf16, #tpu.memory_space<vmem>>, vector<1x384x128xbf16>
    %43 = vector.shape_cast %42 : vector<1x384x128xbf16> to vector<384x128xbf16>
    %cst_23 = arith.constant dense<0.000000e+00> : vector<32x128xf32>
    %44 = tpu.matmul %41, %43, %cst_23 {dimension_numbers = #tpu.dot_dimension_numbers<[1], [0], [0], [1], [0, 0, 1, 1], [], []>} : vector<32x384xbf16>, vector<384x128xbf16>, vector<32x128xf32> -> vector<32x128xf32>
    %45 = vector.broadcast %23 : vector<1x128xf32> to vector<32x128xf32>
    %46 = arith.addf %44, %45 : vector<32x128xf32>
    %cst_24 = arith.constant 0.000000e+00 : f32
    %47 = vector.broadcast %cst_24 : f32 to vector<32x128xf32>
    %48 = arith.maximumf %46, %47 : vector<32x128xf32>
    %c2_i32_25 = arith.constant 2 : i32
    %49 = tpu.dynamic_rotate %48 by %c2_i32_25 dim 0 : vector<32x128xf32>, i32 -> vector<32x128xf32>
    %cst_26 = arith.constant 0.000000e+00 : f32
    %50 = vector.shape_cast %27 : vector<32x1xi1> to vector<32x1xi1>
    %51 = vector.broadcast %50 : vector<32x1xi1> to vector<32x128xi1>
    %52 = vector.broadcast %cst_26 : f32 to vector<32x128xf32>
    %53 = arith.select %51, %49, %52 : vector<32x128xi1>, vector<32x128xf32>
    %c1_i32_27 = arith.constant 1 : i32
    %54 = tpu.dynamic_rotate %48 by %c1_i32_27 dim 0 : vector<32x128xf32>, i32 -> vector<32x128xf32>
    %cst_28 = arith.constant 0.000000e+00 : f32
    %55 = vector.shape_cast %29 : vector<32x1xi1> to vector<32x1xi1>
    %56 = vector.broadcast %55 : vector<32x1xi1> to vector<32x128xi1>
    %57 = vector.broadcast %cst_28 : f32 to vector<32x128xf32>
    %58 = arith.select %56, %54, %57 : vector<32x128xi1>, vector<32x128xf32>
    %59 = tpu.concatenate %53, %58, %48 in 1 : vector<32x128xf32>, vector<32x128xf32>, vector<32x128xf32> -> vector<32x384xf32>
    %60 = arith.truncf %59 : vector<32x384xf32> to vector<32x384xbf16>
    %c0_29 = arith.constant 0 : index
    %c0_30 = arith.constant 0 : index
    %c0_31 = arith.constant 0 : index
    %61 = vector.load %arg3[%c0_29, %c0_30, %c0_31] : memref<3x512x128xbf16, #tpu.memory_space<vmem>>, vector<1x384x128xbf16>
    %62 = vector.shape_cast %61 : vector<1x384x128xbf16> to vector<384x128xbf16>
    %cst_32 = arith.constant dense<0.000000e+00> : vector<32x128xf32>
    %63 = tpu.matmul %60, %62, %cst_32 {dimension_numbers = #tpu.dot_dimension_numbers<[1], [0], [0], [1], [0, 0, 1, 1], [], []>} : vector<32x384xbf16>, vector<384x128xbf16>, vector<32x128xf32> -> vector<32x128xf32>
    %64 = vector.broadcast %25 : vector<1x128xf32> to vector<32x128xf32>
    %65 = arith.addf %63, %64 : vector<32x128xf32>
    %cst_33 = arith.constant 0.000000e+00 : f32
    %66 = vector.broadcast %cst_33 : f32 to vector<32x128xf32>
    %67 = arith.maximumf %65, %66 : vector<32x128xf32>
    %c0_34 = arith.constant 0 : index
    %c2 = arith.constant 2 : index
    %c0_35 = arith.constant 0 : index
    %68 = vector.load %arg5[%c0_34, %c2, %c0_35] : memref<3x3x128xf32, #tpu.memory_space<vmem>>, vector<1x1x128xf32>
    %69 = vector.shape_cast %68 : vector<1x1x128xf32> to vector<1x128xf32>
    %70 = arith.truncf %4 : vector<32x128xf32> to vector<32x128xbf16>
    %c0_36 = arith.constant 0 : index
    %c0_37 = arith.constant 0 : index
    %c0_38 = arith.constant 0 : index
    %71 = vector.load %arg4[%c0_36, %c0_37, %c0_38] : memref<1x128x128xbf16, #tpu.memory_space<vmem>>, vector<1x128x128xbf16>
    %72 = vector.shape_cast %71 : vector<1x128x128xbf16> to vector<128x128xbf16>
    %cst_39 = arith.constant dense<0.000000e+00> : vector<32x128xf32>
    %73 = tpu.matmul %70, %72, %cst_39 {dimension_numbers = #tpu.dot_dimension_numbers<[1], [0], [0], [1], [0, 0, 1, 1], [], []>} : vector<32x128xbf16>, vector<128x128xbf16>, vector<32x128xf32> -> vector<32x128xf32>
    %74 = arith.addf %67, %73 : vector<32x128xf32>
    %75 = vector.broadcast %69 : vector<1x128xf32> to vector<32x128xf32>
    %76 = arith.addf %74, %75 : vector<32x128xf32>
    %c1_40 = arith.constant 1 : index
    %c0_41 = arith.constant 0 : index
    %c0_42 = arith.constant 0 : index
    %77 = vector.load %arg5[%c1_40, %c0_41, %c0_42] : memref<3x3x128xf32, #tpu.memory_space<vmem>>, vector<1x1x128xf32>
    %78 = vector.shape_cast %77 : vector<1x1x128xf32> to vector<1x128xf32>
    %c1_43 = arith.constant 1 : index
    %c1_44 = arith.constant 1 : index
    %c0_45 = arith.constant 0 : index
    %79 = vector.load %arg5[%c1_43, %c1_44, %c0_45] : memref<3x3x128xf32, #tpu.memory_space<vmem>>, vector<1x1x128xf32>
    %80 = vector.shape_cast %79 : vector<1x1x128xf32> to vector<1x128xf32>
    %c4_i32 = arith.constant 4 : i32
    %81 = vector.broadcast %c4_i32 : i32 to vector<32x1xi32>
    %82 = arith.cmpi sge, %21, %81 : vector<32x1xi32>
    %c2_i32_46 = arith.constant 2 : i32
    %83 = vector.broadcast %c2_i32_46 : i32 to vector<32x1xi32>
    %84 = arith.cmpi sge, %21, %83 : vector<32x1xi32>
    %c4_i32_47 = arith.constant 4 : i32
    %85 = tpu.dynamic_rotate %76 by %c4_i32_47 dim 0 : vector<32x128xf32>, i32 -> vector<32x128xf32>
    %cst_48 = arith.constant 0.000000e+00 : f32
    %86 = vector.shape_cast %82 : vector<32x1xi1> to vector<32x1xi1>
    %87 = vector.broadcast %86 : vector<32x1xi1> to vector<32x128xi1>
    %88 = vector.broadcast %cst_48 : f32 to vector<32x128xf32>
    %89 = arith.select %87, %85, %88 : vector<32x128xi1>, vector<32x128xf32>
    %c2_i32_49 = arith.constant 2 : i32
    %90 = tpu.dynamic_rotate %76 by %c2_i32_49 dim 0 : vector<32x128xf32>, i32 -> vector<32x128xf32>
    %cst_50 = arith.constant 0.000000e+00 : f32
    %91 = vector.shape_cast %84 : vector<32x1xi1> to vector<32x1xi1>
    %92 = vector.broadcast %91 : vector<32x1xi1> to vector<32x128xi1>
    %93 = vector.broadcast %cst_50 : f32 to vector<32x128xf32>
    %94 = arith.select %92, %90, %93 : vector<32x128xi1>, vector<32x128xf32>
    %95 = tpu.concatenate %89, %94, %76 in 1 : vector<32x128xf32>, vector<32x128xf32>, vector<32x128xf32> -> vector<32x384xf32>
    %96 = arith.truncf %95 : vector<32x384xf32> to vector<32x384xbf16>
    %c1_51 = arith.constant 1 : index
    %c0_52 = arith.constant 0 : index
    %c0_53 = arith.constant 0 : index
    %97 = vector.load %arg2[%c1_51, %c0_52, %c0_53] : memref<3x384x128xbf16, #tpu.memory_space<vmem>>, vector<1x384x128xbf16>
    %98 = vector.shape_cast %97 : vector<1x384x128xbf16> to vector<384x128xbf16>
    %cst_54 = arith.constant dense<0.000000e+00> : vector<32x128xf32>
    %99 = tpu.matmul %96, %98, %cst_54 {dimension_numbers = #tpu.dot_dimension_numbers<[1], [0], [0], [1], [0, 0, 1, 1], [], []>} : vector<32x384xbf16>, vector<384x128xbf16>, vector<32x128xf32> -> vector<32x128xf32>
    %100 = vector.broadcast %78 : vector<1x128xf32> to vector<32x128xf32>
    %101 = arith.addf %99, %100 : vector<32x128xf32>
    %cst_55 = arith.constant 0.000000e+00 : f32
    %102 = vector.broadcast %cst_55 : f32 to vector<32x128xf32>
    %103 = arith.maximumf %101, %102 : vector<32x128xf32>
    %c4_i32_56 = arith.constant 4 : i32
    %104 = tpu.dynamic_rotate %103 by %c4_i32_56 dim 0 : vector<32x128xf32>, i32 -> vector<32x128xf32>
    %cst_57 = arith.constant 0.000000e+00 : f32
    %105 = vector.shape_cast %82 : vector<32x1xi1> to vector<32x1xi1>
    %106 = vector.broadcast %105 : vector<32x1xi1> to vector<32x128xi1>
    %107 = vector.broadcast %cst_57 : f32 to vector<32x128xf32>
    %108 = arith.select %106, %104, %107 : vector<32x128xi1>, vector<32x128xf32>
    %c2_i32_58 = arith.constant 2 : i32
    %109 = tpu.dynamic_rotate %103 by %c2_i32_58 dim 0 : vector<32x128xf32>, i32 -> vector<32x128xf32>
    %cst_59 = arith.constant 0.000000e+00 : f32
    %110 = vector.shape_cast %84 : vector<32x1xi1> to vector<32x1xi1>
    %111 = vector.broadcast %110 : vector<32x1xi1> to vector<32x128xi1>
    %112 = vector.broadcast %cst_59 : f32 to vector<32x128xf32>
    %113 = arith.select %111, %109, %112 : vector<32x128xi1>, vector<32x128xf32>
    %114 = tpu.concatenate %108, %113, %103 in 1 : vector<32x128xf32>, vector<32x128xf32>, vector<32x128xf32> -> vector<32x384xf32>
    %115 = arith.truncf %114 : vector<32x384xf32> to vector<32x384xbf16>
    %c1_60 = arith.constant 1 : index
    %c0_61 = arith.constant 0 : index
    %c0_62 = arith.constant 0 : index
    %116 = vector.load %arg3[%c1_60, %c0_61, %c0_62] : memref<3x512x128xbf16, #tpu.memory_space<vmem>>, vector<1x384x128xbf16>
    %117 = vector.shape_cast %116 : vector<1x384x128xbf16> to vector<384x128xbf16>
    %cst_63 = arith.constant dense<0.000000e+00> : vector<32x128xf32>
    %118 = tpu.matmul %115, %117, %cst_63 {dimension_numbers = #tpu.dot_dimension_numbers<[1], [0], [0], [1], [0, 0, 1, 1], [], []>} : vector<32x384xbf16>, vector<384x128xbf16>, vector<32x128xf32> -> vector<32x128xf32>
    %119 = vector.broadcast %80 : vector<1x128xf32> to vector<32x128xf32>
    %120 = arith.addf %118, %119 : vector<32x128xf32>
    %cst_64 = arith.constant 0.000000e+00 : f32
    %121 = vector.broadcast %cst_64 : f32 to vector<32x128xf32>
    %122 = arith.maximumf %120, %121 : vector<32x128xf32>
    %123 = arith.addf %122, %76 : vector<32x128xf32>
    %c2_65 = arith.constant 2 : index
    %c0_66 = arith.constant 0 : index
    %c0_67 = arith.constant 0 : index
    %124 = vector.load %arg5[%c2_65, %c0_66, %c0_67] : memref<3x3x128xf32, #tpu.memory_space<vmem>>, vector<1x1x128xf32>
    %125 = vector.shape_cast %124 : vector<1x1x128xf32> to vector<1x128xf32>
    %c2_68 = arith.constant 2 : index
    %c1_69 = arith.constant 1 : index
    %c0_70 = arith.constant 0 : index
    %126 = vector.load %arg5[%c2_68, %c1_69, %c0_70] : memref<3x3x128xf32, #tpu.memory_space<vmem>>, vector<1x1x128xf32>
    %127 = vector.shape_cast %126 : vector<1x1x128xf32> to vector<1x128xf32>
    %c8_i32 = arith.constant 8 : i32
    %128 = vector.broadcast %c8_i32 : i32 to vector<32x1xi32>
    %129 = arith.cmpi sge, %21, %128 : vector<32x1xi32>
    %c4_i32_71 = arith.constant 4 : i32
    %130 = vector.broadcast %c4_i32_71 : i32 to vector<32x1xi32>
    %131 = arith.cmpi sge, %21, %130 : vector<32x1xi32>
    %c8_i32_72 = arith.constant 8 : i32
    %132 = tpu.dynamic_rotate %123 by %c8_i32_72 dim 0 : vector<32x128xf32>, i32 -> vector<32x128xf32>
    %cst_73 = arith.constant 0.000000e+00 : f32
    %133 = vector.shape_cast %129 : vector<32x1xi1> to vector<32x1xi1>
    %134 = vector.broadcast %133 : vector<32x1xi1> to vector<32x128xi1>
    %135 = vector.broadcast %cst_73 : f32 to vector<32x128xf32>
    %136 = arith.select %134, %132, %135 : vector<32x128xi1>, vector<32x128xf32>
    %c4_i32_74 = arith.constant 4 : i32
    %137 = tpu.dynamic_rotate %123 by %c4_i32_74 dim 0 : vector<32x128xf32>, i32 -> vector<32x128xf32>
    %cst_75 = arith.constant 0.000000e+00 : f32
    %138 = vector.shape_cast %131 : vector<32x1xi1> to vector<32x1xi1>
    %139 = vector.broadcast %138 : vector<32x1xi1> to vector<32x128xi1>
    %140 = vector.broadcast %cst_75 : f32 to vector<32x128xf32>
    %141 = arith.select %139, %137, %140 : vector<32x128xi1>, vector<32x128xf32>
    %142 = tpu.concatenate %136, %141, %123 in 1 : vector<32x128xf32>, vector<32x128xf32>, vector<32x128xf32> -> vector<32x384xf32>
    %143 = arith.truncf %142 : vector<32x384xf32> to vector<32x384xbf16>
    %c2_76 = arith.constant 2 : index
    %c0_77 = arith.constant 0 : index
    %c0_78 = arith.constant 0 : index
    %144 = vector.load %arg2[%c2_76, %c0_77, %c0_78] : memref<3x384x128xbf16, #tpu.memory_space<vmem>>, vector<1x384x128xbf16>
    %145 = vector.shape_cast %144 : vector<1x384x128xbf16> to vector<384x128xbf16>
    %cst_79 = arith.constant dense<0.000000e+00> : vector<32x128xf32>
    %146 = tpu.matmul %143, %145, %cst_79 {dimension_numbers = #tpu.dot_dimension_numbers<[1], [0], [0], [1], [0, 0, 1, 1], [], []>} : vector<32x384xbf16>, vector<384x128xbf16>, vector<32x128xf32> -> vector<32x128xf32>
    %147 = vector.broadcast %125 : vector<1x128xf32> to vector<32x128xf32>
    %148 = arith.addf %146, %147 : vector<32x128xf32>
    %cst_80 = arith.constant 0.000000e+00 : f32
    %149 = vector.broadcast %cst_80 : f32 to vector<32x128xf32>
    %150 = arith.maximumf %148, %149 : vector<32x128xf32>
    %c8_i32_81 = arith.constant 8 : i32
    %151 = tpu.dynamic_rotate %150 by %c8_i32_81 dim 0 : vector<32x128xf32>, i32 -> vector<32x128xf32>
    %cst_82 = arith.constant 0.000000e+00 : f32
    %152 = vector.shape_cast %129 : vector<32x1xi1> to vector<32x1xi1>
    %153 = vector.broadcast %152 : vector<32x1xi1> to vector<32x128xi1>
    %154 = vector.broadcast %cst_82 : f32 to vector<32x128xf32>
    %155 = arith.select %153, %151, %154 : vector<32x128xi1>, vector<32x128xf32>
    %c4_i32_83 = arith.constant 4 : i32
    %156 = tpu.dynamic_rotate %150 by %c4_i32_83 dim 0 : vector<32x128xf32>, i32 -> vector<32x128xf32>
    %cst_84 = arith.constant 0.000000e+00 : f32
    %157 = vector.shape_cast %131 : vector<32x1xi1> to vector<32x1xi1>
    %158 = vector.broadcast %157 : vector<32x1xi1> to vector<32x128xi1>
    %159 = vector.broadcast %cst_84 : f32 to vector<32x128xf32>
    %160 = arith.select %158, %156, %159 : vector<32x128xi1>, vector<32x128xf32>
    %161 = tpu.concatenate %155, %160, %150, %123 in 1 : vector<32x128xf32>, vector<32x128xf32>, vector<32x128xf32>, vector<32x128xf32> -> vector<32x512xf32>
    %162 = arith.truncf %161 : vector<32x512xf32> to vector<32x512xbf16>
    %c2_85 = arith.constant 2 : index
    %c0_86 = arith.constant 0 : index
    %c0_87 = arith.constant 0 : index
    %163 = vector.load %arg3[%c2_85, %c0_86, %c0_87] : memref<3x512x128xbf16, #tpu.memory_space<vmem>>, vector<1x512x128xbf16>
    %164 = vector.shape_cast %163 : vector<1x512x128xbf16> to vector<512x128xbf16>
    %cst_88 = arith.constant dense<0.000000e+00> : vector<32x128xf32>
    %165 = tpu.matmul %162, %164, %cst_88 {dimension_numbers = #tpu.dot_dimension_numbers<[1], [0], [0], [1], [0, 0, 1, 1], [], []>} : vector<32x512xbf16>, vector<512x128xbf16>, vector<32x128xf32> -> vector<32x128xf32>
    %166 = vector.broadcast %127 : vector<1x128xf32> to vector<32x128xf32>
    %167 = arith.addf %165, %166 : vector<32x128xf32>
    %168 = vector.extract_strided_slice %167 {offsets = [12, 0], sizes = [4, 128], strides = [1, 1]} : vector<32x128xf32> to vector<4x128xf32>
    %c0_89 = arith.constant 0 : index
    %c0_90 = arith.constant 0 : index
    %169 = vector.load %arg6[%c0_89, %c0_90] : memref<8x128xf32, #tpu.memory_space<vmem>>, vector<4x128xf32>
    tpu.vector_store %arg6[%c0_89, %c0_90], %168 {strides = array<i32>} : memref<8x128xf32, #tpu.memory_space<vmem>>, vector<4x128xf32>,
    %170 = vector.extract_strided_slice %167 {offsets = [28, 0], sizes = [4, 128], strides = [1, 1]} : vector<32x128xf32> to vector<4x128xf32>
    %c4 = arith.constant 4 : index
    %c0_91 = arith.constant 0 : index
    %171 = vector.load %arg6[%c4, %c0_91] : memref<8x128xf32, #tpu.memory_space<vmem>>, vector<4x128xf32>
    tpu.vector_store %arg6[%c4, %c0_91], %170 {strides = array<i32>} : memref<8x128xf32, #tpu.memory_space<vmem>>, vector<4x128xf32>,
    return
  }
  func.func @transform_0(%arg0: i32) -> (i32, i32) {
    %c0_i32 = arith.constant 0 : i32
    %c0_i32_0 = arith.constant 0 : i32
    return %arg0, %c0_i32 : i32, i32
  }
  func.func @transform_1(%arg0: i32) -> (i32, i32, i32) {
    %c0_i32 = arith.constant 0 : i32
    %c0_i32_0 = arith.constant 0 : i32
    %c0_i32_1 = arith.constant 0 : i32
    %c0_i32_2 = arith.constant 0 : i32
    return %c0_i32, %c0_i32_0, %c0_i32_1 : i32, i32, i32
  }
  func.func @transform_2(%arg0: i32) -> (i32, i32, i32) {
    %c0_i32 = arith.constant 0 : i32
    %c0_i32_0 = arith.constant 0 : i32
    %c0_i32_1 = arith.constant 0 : i32
    %c0_i32_2 = arith.constant 0 : i32
    return %c0_i32, %c0_i32_0, %c0_i32_1 : i32, i32, i32
  }
  func.func @transform_3(%arg0: i32) -> (i32, i32, i32) {
    %c0_i32 = arith.constant 0 : i32
    %c0_i32_0 = arith.constant 0 : i32
    %c0_i32_1 = arith.constant 0 : i32
    %c0_i32_2 = arith.constant 0 : i32
    return %c0_i32, %c0_i32_0, %c0_i32_1 : i32, i32, i32
  }
  func.func @transform_4(%arg0: i32) -> (i32, i32, i32) {
    %c0_i32 = arith.constant 0 : i32
    %c0_i32_0 = arith.constant 0 : i32
    %c0_i32_1 = arith.constant 0 : i32
    %c0_i32_2 = arith.constant 0 : i32
    return %c0_i32, %c0_i32_0, %c0_i32_1 : i32, i32, i32
  }
  func.func @transform_5(%arg0: i32) -> (i32, i32) {
    %c0_i32 = arith.constant 0 : i32
    %c0_i32_0 = arith.constant 0 : i32
    return %arg0, %c0_i32 : i32, i32
  }
}

</mosaic_0001>

<bundles_post_ra>
// kernel: tpu_custom_call.1
= control target key start
LH: loop header
LB: loop body
LE: loop exit
PB: predicated region body
PF: predicated region fallthrough
CT: control target
= control target key end

     0   :  { %10 = vsyncpa [#allocation4], 0  ;;  %s3352_s0 = inlined_call_operand.vmem [shape: f32[32,1], index: 0, kind: input, shape index: {}]   ;;  %s3353_s1 = inlined_call_operand.hbm [shape: bf16[3,384,128], index: 1, kind: input, shape index: {}]   ;;  %s3354_s2 = inlined_call_operand.hbm [shape: bf16[3,512,128], index: 2, kind: input, shape index: {}]   ;;  %s3355_s3 = inlined_call_operand.hbm [shape: bf16[1,128,128], index: 3, kind: input, shape index: {}]   ;;  %s3356_s4 = inlined_call_operand.vmem [shape: f32[3,3,128], index: 4, kind: input, shape index: {}]   ;;  %s3357_s5 = inlined_call_operand.hbm [shape: f32[8,128], index: 5, kind: output, shape index: {}]  }
   0x1   :  { %11 = vsyncpa [#allocation7], 0 }
   0x2   :  { %12 = vsyncpa [#allocation5], 0  ;;  %s32_s20 = sshll.u32 %s3354_s2, 4  ;;  %s3058_s21 = smov [#allocation6]   ;;  %s33_s20 = int_to_ptr.hbm [resolvable:$true] %s32_s20 }
   0x3   :  { %s34_s22 = sshll.u32 %s3058_s21, 4  ;;  %s19_s25 = sshll.u32 %s3353_s1, 4  ;;  %s35_s22 = int_to_ptr.vmem [resolvable:$true] %s34_s22  ;;  %s20_s25 = int_to_ptr.hbm [resolvable:$true] %s19_s25 }
   0x4   :  { %s3059_s26 = smov 64   ;;  %s3060_s27 = smov 4  }
   0x5   :  { %40 = dma.hbm_to_vmem [thread:$0]  %s33_s20, 12288, %s35_s22, [#allocation7], %s3059_s26, %s3059_s26, %s3060_s27  }
   0x6   :  { %s3061_s28 = smov [#allocation3]   ;;  %s45_s7 = sshll.u32 %s3355_s3, 4  ;;  %s46_s7 = int_to_ptr.hbm [resolvable:$true] %s45_s7 }
   0x7   :  { %s21_s29 = sshll.u32 %s3061_s28, 4  ;;  %s3062_s2 = smov [#allocation8]   ;;  %s22_s29 = int_to_ptr.vmem [resolvable:$true] %s21_s29 }
   0x8   :  { %27 = dma.hbm_to_vmem [thread:$0]  %s20_s25, 9216, %s22_s29, [#allocation4], %s3059_s26, %s3059_s26, %s3060_s27  }
   0x9   :  { %s47_s8 = sshll.u32 %s3062_s2, 4  ;;  %s48_s8 = int_to_ptr.vmem [resolvable:$true] %s47_s8 }
   0xa   :  { %53 = dma.hbm_to_vmem [thread:$0]  %s46_s7, 1024, %s48_s8, [#allocation7], %s3059_s26, %s3059_s26, %s3060_s27  }
   0xb   :  { %3052 = dma.done.wait [#allocation4], 9216  }
   0xc   :  { %3053 = vsyncadd [#allocation4], 4294958080 }
   0xd   :  { %3054 = dma.done.wait [#allocation7], 13312  }
   0xe   :  { %3055 = vsyncadd [#allocation7], 4294953984  ;;  %v3063_v0 = vmov 0.0   ;;  %v2788_v1 = vld [vmem:[#allocation3 + $0x38] sm:$0xff]  ;;  %v2787_v4 = vld [vmem:[#allocation3 + $0x30] sm:$0xff]  ;;  %vm76_vm0 = vcmask 7168   ;;  %v85_v17 = vlaneseq }
   0xf   :  { %68 = vst [vmem:[#allocation2] sm:$0xff] %v3063_v0  ;;  %v2796_v2 = vld [vmem:[#allocation3 + $0x78] sm:$0xff]  ;;  %389 = vmatpush.bf16.msra.mxu0 %v2788_v1  ;;  %v2795_v5 = vld [vmem:[#allocation3 + $0x70] sm:$0xff]  ;;  %v2786_v7 = vld [vmem:[#allocation3 + $0x28] sm:$0xff]  ;;  %vm3064_vm5 = vmmov 1   ;;  %s3065_s28 = smov [#allocation9]  }
  0x10   :  { %69 = vst [vmem:[#allocation2 + $0x8] sm:$0xff] %v3063_v0  ;;  %v2804_v3 = vld [vmem:[#allocation3 + $0xb8] sm:$0xff]  ;;  %408 = vmatpush.bf16.msra.mxu1 %v2796_v2  ;;  %v2803_v6 = vld [vmem:[#allocation3 + $0xb0] sm:$0xff]  ;;  %v2794_v8 = vld [vmem:[#allocation3 + $0x68] sm:$0xff]  ;;  %v3125_v22 = vshrl.u32 %v85_v17, 7  ;;  %s2064_s29 = sshll.u32 %s3065_s28, 4  ;;  %s2065_s29 = int_to_ptr.vmem [resolvable:$true] %s2064_s29 }
  0x11   :  { %71 = vst [vmem:[#allocation2 + $0x18] sm:$0xff] %v3063_v0  ;;  %427 = vmatpush.bf16.msra.mxu2 %v2804_v3  ;;  %v2802_v9 = vld [vmem:[#allocation3 + $0xa8] sm:$0xff]  ;;  %v72_v10 = vld [vmem:[%s3352_s0] sm:$0xff]  ;;  %v75_v12 = vld [vmem:[%s3352_s0 + $0x18] sm:$0xff]  ;;  %s2066_s7 = sshll.u32 %s3357_s5, 4  ;;  %s2067_s7 = int_to_ptr.hbm [resolvable:$true] %s2066_s7 }
  0x12   :  { %70 = vst [vmem:[#allocation2 + $0x10] sm:$0xff] %v3063_v0  ;;  %v73_v11 = vld [vmem:[%s3352_s0 + $0x8] sm:$0xff]  ;;  %v2785_v13 = vld [vmem:[#allocation3 + $0x20] sm:$0xff]  ;;  %v74_v14 = vld [vmem:[%s3352_s0 + $0x10] sm:$0xff]  ;;  %v3128_v28 = vand.u32 15, %v3125_v22  ;;  %vm152_vm1 = vcmp.lt.s32.totalorder %v3125_v22, 2 }
  0x13   :  { %390 = vmatpush.bf16.msra.mxu0 %v2787_v4  ;;  %77 = vst.msk [vmem:[#allocation2] sm:$0xff] %vm76_vm0, %v72_v10  ;;  %v2793_v15 = vld [vmem:[#allocation3 + $0x60] sm:$0xff]  ;;  %v2784_v18 = vld [vmem:[#allocation3 + $0x18] sm:$0xff]  ;;  %v2783_v21 = vld [vmem:[#allocation3 + $0x10] sm:$0xff]  ;;  %vm173_vm2 = vcmp.lt.s32.totalorder %v3125_v22, 1  ;;  %v88_v52 = vadd.s32 16, %v3125_v22 }
  0x14   :  { %409 = vmatpush.bf16.msra.mxu1 %v2795_v5  ;;  %78 = vst.msk [vmem:[#allocation2 + $0x8] sm:$0xff] %vm76_vm0, %v73_v11  ;;  %v2801_v16 = vld [vmem:[#allocation3 + $0xa0] sm:$0xff]  ;;  %v2792_v19 = vld [vmem:[#allocation3 + $0x58] sm:$0xff]  ;;  %v2791_v23 = vld [vmem:[#allocation3 + $0x50] sm:$0xff]  ;;  %vm140_vm3 = vcmp.ge.s32.totalorder %v3128_v28, 2  ;;  %vm144_vm4 = vcmp.ge.s32.totalorder %v3128_v28, 1 }
  0x15   :  { %428 = vmatpush.bf16.msra.mxu2 %v2803_v6  ;;  %80 = vst.msk [vmem:[#allocation2 + $0x18] sm:$0xff] %vm76_vm0, %v75_v12  ;;  %v2800_v20 = vld [vmem:[#allocation3 + $0x98] sm:$0xff]  ;;  %v2799_v26 = vld [vmem:[#allocation3 + $0x90] sm:$0xff]  ;;  %v2782_v31 = vld [vmem:[#allocation3 + $0x8] sm:$0xff]  ;;  %v3160_v55 = vand.u32 15, %v88_v52  ;;  %vm838_vm12 = vcmp.lt.s32.totalorder %v3125_v22, 4 }
  0x16   :  { %79 = vst.msk [vmem:[#allocation2 + $0x10] sm:$0xff] %vm76_vm0, %v74_v14  ;;  %v2790_v32 = vld [vmem:[#allocation3 + $0x48] sm:$0xff]  ;;  %v2781_v39 = vld [vmem:[#allocation3] sm:$0xff]  ;;  %v2828_v45 = vld [vmem:[#allocation6 + $0xb8] sm:$0xff]  ;;  %vm830_vm13 = vcmp.ge.s32.totalorder %v3128_v28, 4 }
  0x17   :  { %391 = vmatpush.bf16.msra.mxu0 %v2786_v7  ;;  %v2798_v37 = vld [vmem:[#allocation3 + $0x88] sm:$0xff]  ;;  %v2789_v40 = vld [vmem:[#allocation3 + $0x40] sm:$0xff]  ;;  %vm3143_vm6 = vmpackc.low %vm3064_vm5, %vm140_vm3  ;;  %vm142_vm8 = vcmp.ge.s32.totalorder %v3160_v55, 2  ;;  %vm146_vm9 = vcmp.ge.s32.totalorder %v3160_v55, 1  ;;  %vm832_vm15 = vcmp.ge.s32.totalorder %v3160_v55, 4 }
  0x18   :  { %410 = vmatpush.bf16.msra.mxu1 %v2794_v8  ;;  %v2797_v44 = vld [vmem:[#allocation3 + $0x80] sm:$0xff]  ;;  %vm3148_vm7 = vmpackc.low %vm3064_vm5, %vm144_vm4  ;;  %v2827_v51 = vld [vmem:[#allocation6 + $0xb0] sm:$0xff] }
  0x19   :  { %429 = vmatpush.bf16.msra.mxu2 %v2802_v9  ;;  %v2826_v54 = vld [vmem:[#allocation6 + $0xa8] sm:$0xff]  ;;  %vm3173_vm10 = vmpackc.low %vm3064_vm5, %vm142_vm8  ;;  %v2825_v4 = vld [vmem:[#allocation6 + $0xa0] sm:$0xff] }
  0x1a   :  { %v81_v24 = vld [vmem:[#allocation2] sm:$0xff]  ;;  %vm3178_vm11 = vmpackc.low %vm3064_vm5, %vm146_vm9  ;;  %v2824_v5 = vld [vmem:[#allocation6 + $0x98] sm:$0xff] }
  0x1b   :  { %392 = vmatpush.bf16.msra.mxu0 %v2785_v13  ;;  %v82_v25 = vld [vmem:[#allocation2 + $0x8] sm:$0xff]  ;;  %v148_v29 = vrot.slane %v81_v24, 6  ;;  %v169_v34 = vrot.slane %v81_v24, 7  ;;  %v2812_v6 = vld [vmem:[#allocation6 + $0x38] sm:$0xff]  ;;  %v2823_v9 = vld [vmem:[#allocation6 + $0x90] sm:$0xff] }
  0x1c   :  { %411 = vmatpush.bf16.msra.mxu1 %v2793_v15  ;;  %v84_v27 = vld [vmem:[#allocation2 + $0x18] sm:$0xff]  ;;  %v149_v30 = vrot.slane %v82_v25, 6  ;;  %v170_v35 = vrot.slane %v82_v25, 7  ;;  %v3152_v50 = vpack.c.bf16 %v82_v25, %v81_v24  ;;  %673 = vmatpush.bf16.msra.mxu3 %v2812_v6  ;;  %v2811_v10 = vld [vmem:[#allocation6 + $0x30] sm:$0xff]  ;;  %v2822_v13 = vld [vmem:[#allocation6 + $0x88] sm:$0xff] }
  0x1d   :  { %430 = vmatpush.bf16.msra.mxu2 %v2801_v16  ;;  %v151_v33 = vrot.slane %v84_v27, 6  ;;  %v172_v36 = vrot.slane %v84_v27, 7  ;;  %v83_v53 = vld [vmem:[#allocation2 + $0x10] sm:$0xff]  ;;  %v2820_v7 = vld [vmem:[#allocation6 + $0x78] sm:$0xff]  ;;  %v2810_v14 = vld [vmem:[#allocation6 + $0x28] sm:$0xff] }
  0x1e   :  { %v155_v38 = vsel %vm152_vm1, %v148_v29, %v149_v30  ;;  %v176_v42 = vsel %vm173_vm2, %v169_v34, %v170_v35  ;;  %v150_v56 = vrot.slane %v83_v53, 6  ;;  %v171_v57 = vrot.slane %v83_v53, 7  ;;  %v2836_v8 = vld [vmem:[#allocation8 + $0x38] sm:$0xff]  ;;  %v2819_v11 = vld [vmem:[#allocation6 + $0x70] sm:$0xff]  ;;  %v2818_v15 = vld [vmem:[#allocation6 + $0x68] sm:$0xff] }
  0x1f   :  { %393 = vmatpush.bf16.msra.mxu0 %v2784_v18  ;;  %v156_v41 = vsel %vm152_vm1, %v151_v33, %v148_v29  ;;  %v177_v43 = vsel %vm173_vm2, %v172_v36, %v169_v34  ;;  %v3182_v3 = vpack.c.bf16 %v84_v27, %v83_v53  ;;  %v2835_v12 = vld [vmem:[#allocation8 + $0x30] sm:$0xff]  ;;  %v2834_v16 = vld [vmem:[#allocation8 + $0x28] sm:$0xff]  ;;  %v2821_v17 = vld [vmem:[#allocation6 + $0x80] sm:$0xff] }
  0x20   :  { %412 = vmatpush.bf16.msra.mxu1 %v2792_v19  ;;  %v2174_v47 = vpack.c.bf16 %v155_v38, %v156_v41  ;;  %v2180_v48 = vpack.c.bf16 %v176_v42, %v177_v43  ;;  %v153_v58 = vsel %vm152_vm1, %v150_v56, %v151_v33  ;;  %v154_v59 = vsel %vm152_vm1, %v149_v30, %v150_v56  ;;  %v2809_v18 = vld [vmem:[#allocation6 + $0x20] sm:$0xff]  ;;  %v2832_v24 = vld [vmem:[#allocation8 + $0x18] sm:$0xff]  ;;  %v2807_v25 = vld [vmem:[#allocation6 + $0x10] sm:$0xff] }
  0x21   :  { %431 = vmatpush.bf16.msra.mxu2 %v2800_v20  ;;  %v174_v60 = vsel %vm173_vm2, %v171_v57, %v172_v36  ;;  %v175_v61 = vsel %vm173_vm2, %v170_v35, %v171_v57  ;;  %v2177_v63 = vpack.c.bf16 %v153_v58, %v154_v59  ;;  %674 = vmatpush.bf16.msra.mxu3 %v2811_v10  ;;  %v2817_v19 = vld [vmem:[#allocation6 + $0x60] sm:$0xff]  ;;  %v2831_v27 = vld [vmem:[#allocation8 + $0x10] sm:$0xff]  ;;  %v2830_v33 = vld [vmem:[#allocation8 + $0x8] sm:$0xff] }
  0x22   :  { %v2183_v1 = vpack.c.bf16 %v174_v60, %v175_v61  ;;  %v2833_v20 = vld [vmem:[#allocation8 + $0x20] sm:$0xff]  ;;  %v2860_v49 = vld [vmem:[#allocation3 + $0x178] sm:$0xff]  ;;  %v2854_v2 = vld [vmem:[#allocation3 + $0x148] sm:$0xff] }
  0x23   :  { %394 = vmatpush.bf16.msra.mxu0 %v2783_v21  ;;  %v2808_v21 = vld [vmem:[#allocation6 + $0x18] sm:$0xff]  ;;  %v2949_v34 = vld [vmem:[%s3356_s4] ss:$0 sm:$0xff]  ;;  %vm3249_vm14 = vmpackc.low %vm3064_vm5, %vm830_vm13 }
  0x24   :  { %413 = vmatpush.bf16.msra.mxu1 %v2791_v23  ;;  %v2816_v23 = vld [vmem:[#allocation6 + $0x58] sm:$0xff]  ;;  %v2805_v35 = vld [vmem:[#allocation6] sm:$0xff]  ;;  %vm3271_vm0 = vmpackc.low %vm3064_vm5, %vm832_vm15 }
  0x25   :  { %432 = vmatpush.bf16.msra.mxu2 %v2799_v26  ;;  %675 = vmatpush.bf16.msra.mxu3 %v2810_v14  ;;  %v2815_v26 = vld [vmem:[#allocation6 + $0x50] sm:$0xff]  ;;  %v2813_v36 = vld [vmem:[#allocation6 + $0x40] sm:$0xff]  ;;  %v2884_v55 = vld [vmem:[#allocation6 + $0x1b8] sm:$0xff] }
  0x26   :  { %v2892_v46 = vld [vmem:[#allocation3 + $0x1b8] sm:$0xff]  ;;  %v2886_v62 = vld [vmem:[#allocation3 + $0x188] sm:$0xff] }
  0x27   :  { %395 = vmatpush.bf16.msra.mxu0 %v2782_v31  ;;  %v2806_v31 = vld [vmem:[#allocation6 + $0x8] sm:$0xff] }
  0x28   :  { %414 = vmatpush.bf16.msra.mxu1 %v2790_v32  ;;  %v2814_v32 = vld [vmem:[#allocation6 + $0x48] sm:$0xff] }
  0x29   :  { %433 = vmatpush.bf16.msra.mxu2 %v2798_v37  ;;  %676 = vmatpush.bf16.msra.mxu3 %v2809_v18  ;;  %v2829_v37 = vld [vmem:[#allocation8] sm:$0xff] }
  0x2b   :  { %396 = vmatpush.bf16.msra.mxu0 %v2781_v39 }
  0x2c   :  { %415 = vmatpush.bf16.msra.mxu1 %v2789_v40 }
  0x2d   :  { %434 = vmatpush.bf16.msra.mxu2 %v2797_v44  ;;  %677 = vmatpush.bf16.msra.mxu3 %v2808_v21 }
  0x2e   :  { %2175 = vmatmul.msk.bf16.vlgmr.msra.gmra.mxu0 %vm3143_vm6, %v2174_v47 }
  0x2f   :  { %2181 = vmatmul.msk.bf16.vlgmr.msra.gmra.mxu1 %vm3148_vm7, %v2180_v48  ;;  %692 = vmatpush.bf16.msrb.mxu0 %v2820_v7 }
  0x30   :  { %711 = vmatpush.bf16.msrb.mxu1 %v2828_v45  ;;  %435 = vmatmul.bf16.vlgmr.msra.gmra.mxu2 %v3152_v50 }
  0x31   :  { %799 = vmatpush.bf16.msrb.mxu2 %v2836_v8  ;;  %678 = vmatpush.bf16.msra.mxu3 %v2807_v25 }
  0x33   :  { %693 = vmatpush.bf16.msrb.mxu0 %v2819_v11 }
  0x34   :  { %712 = vmatpush.bf16.msrb.mxu1 %v2827_v51 }
  0x35   :  { %800 = vmatpush.bf16.msrb.mxu2 %v2835_v12  ;;  %679 = vmatpush.bf16.msra.mxu3 %v2806_v31  ;;  %v2858_v31 = vld [vmem:[#allocation3 + $0x168] sm:$0xff] }
  0x37   :  { %694 = vmatpush.bf16.msrb.mxu0 %v2818_v15 }
  0x38   :  { %713 = vmatpush.bf16.msrb.mxu1 %v2826_v54 }
  0x39   :  { %801 = vmatpush.bf16.msrb.mxu2 %v2834_v16  ;;  %680 = vmatpush.bf16.msra.mxu3 %v2805_v35  ;;  %v2852_v35 = vld [vmem:[#allocation3 + $0x138] sm:$0xff] }
  0x3b   :  { %695 = vmatpush.bf16.msrb.mxu0 %v2817_v19 }
  0x3c   :  { %714 = vmatpush.bf16.msrb.mxu1 %v2825_v4 }
  0x3d   :  { %802 = vmatpush.bf16.msrb.mxu2 %v2833_v20 }
  0x3e   :  { %2178 = vmatmul.msk.bf16.gmra.mxu0 %vm3173_vm10, %v2177_v63 }
  0x3f   :  { %2184 = vmatmul.msk.bf16.gmra.mxu1 %vm3178_vm11, %v2183_v1  ;;  %696 = vmatpush.bf16.msrb.mxu0 %v2816_v23 }
  0x40   :  { %440 = vmatmul.bf16.gmra.mxu2 %v3182_v3  ;;  %715 = vmatpush.bf16.msrb.mxu1 %v2824_v5 }
  0x41   :  { %803 = vmatpush.bf16.msrb.mxu2 %v2832_v24 }
  0x43   :  { %697 = vmatpush.bf16.msrb.mxu0 %v2815_v26 }
  0x44   :  { %716 = vmatpush.bf16.msrb.mxu1 %v2823_v9 }
  0x45   :  { %804 = vmatpush.bf16.msrb.mxu2 %v2831_v27 }
  0x47   :  { %698 = vmatpush.bf16.msrb.mxu0 %v2814_v32  ;;  %v2857_v32 = vld [vmem:[#allocation3 + $0x160] sm:$0xff] }
  0x48   :  { %717 = vmatpush.bf16.msrb.mxu1 %v2822_v13 }
  0x49   :  { %805 = vmatpush.bf16.msrb.mxu2 %v2830_v33  ;;  %v2856_v33 = vld [vmem:[#allocation3 + $0x158] sm:$0xff] }
  0x4b   :  { %699 = vmatpush.bf16.msrb.mxu0 %v2813_v36  ;;  %v2855_v36 = vld [vmem:[#allocation3 + $0x150] sm:$0xff] }
  0x4c   :  { %718 = vmatpush.bf16.msrb.mxu1 %v2821_v17 }
  0x4d   :  { %806 = vmatpush.bf16.msrb.mxu2 %v2829_v37  ;;  %v2843_v37 = vld [vmem:[#allocation3 + $0xf0] sm:$0xff] }
  0x4f   :  { %1086 = vmatpush.bf16.msra.mxu0 %v2852_v35 }
  0x50   :  { %807 = vmatmul.bf16.vlgmr.msrb.gmra.mxu2 %v3152_v50  ;;  %1105 = vmatpush.bf16.msra.mxu1 %v2860_v49 }
  0x60   :  { %812 = vmatmul.bf16.gmra.mxu2 %v3182_v3 }
  0xab   :  { %v398_v29 = vpop.f32.mrf.mxu0 }
  0xac   :  { %v417_v30 = vpop.f32.mrf.mxu1  ;;  %v399_v38 = vadd.f32 %v2949_v34, %v398_v29 }
  0xae   :  { %v418_v42 = vadd.f32 %v417_v30, %v399_v38  ;;  %v2859_v30 = vld [vmem:[#allocation3 + $0x170] sm:$0xff] }
  0xaf   :  { %1106 = vmatpush.bf16.msra.mxu1 %v2859_v30  ;;  %v2851_v38 = vld [vmem:[#allocation3 + $0x130] sm:$0xff] }
  0xb0   :  { %1087 = vmatpush.bf16.msra.mxu0 %v2851_v38 }
  0xb3   :  { %v436_v39 = vpop.f32.mrf.mxu2  ;;  %v400_v40 = vpop.f32.mrf.mxu0  ;;  %1107 = vmatpush.bf16.msra.mxu1 %v2858_v31 }
  0xb4   :  { %v419_v41 = vpop.f32.mrf.mxu1  ;;  %v401_v43 = vadd.f32 %v2949_v34, %v400_v40  ;;  %v437_v44 = vadd.f32 %v436_v39, %v418_v42  ;;  %v2842_v39 = vld [vmem:[#allocation3 + $0xe8] sm:$0xff]  ;;  %v2841_v42 = vld [vmem:[#allocation3 + $0xe0] sm:$0xff] }
  0xb5   :  { %v2850_v40 = vld [vmem:[#allocation3 + $0x128] sm:$0xff] }
  0xb6   :  { %v420_v45 = vadd.f32 %v419_v41, %v401_v43  ;;  %v446_v52 = vmax.f32 %v437_v44, 0.0  ;;  %v2853_v41 = vld [vmem:[#allocation3 + $0x140] sm:$0xff]  ;;  %1088 = vmatpush.bf16.msra.mxu0 %v2850_v40  ;;  %v2840_v44 = vld [vmem:[#allocation3 + $0xd8] sm:$0xff] }
  0xb7   :  { %1108 = vmatpush.bf16.msra.mxu1 %v2857_v32  ;;  %v2849_v43 = vld [vmem:[#allocation3 + $0x120] sm:$0xff] }
  0xb8   :  { %v450_v10 = vrot.slane %v446_v52, 6  ;;  %v462_v11 = vrot.slane %v446_v52, 7 }
  0xba   :  { %1089 = vmatpush.bf16.msra.mxu0 %v2849_v43 }
  0xbb   :  { %v438_v47 = vpop.f32.mrf.mxu2  ;;  %v403_v51 = vpop.f32.mrf.mxu0  ;;  %1109 = vmatpush.bf16.msra.mxu1 %v2856_v33 }
  0xbc   :  { %v439_v48 = vadd.f32 %v438_v47, %v420_v45  ;;  %v422_v54 = vpop.f32.mrf.mxu1  ;;  %v404_v57 = vadd.f32 %v2949_v34, %v403_v51  ;;  %v2848_v45 = vld [vmem:[#allocation3 + $0x118] sm:$0xff]  ;;  %v2839_v51 = vld [vmem:[#allocation3 + $0xd0] sm:$0xff] }
  0xbe   :  { %v447_v53 = vmax.f32 %v439_v48, 0.0  ;;  %v423_v60 = vadd.f32 %v422_v54, %v404_v57  ;;  %1090 = vmatpush.bf16.msra.mxu0 %v2848_v45  ;;  %v2950_v48 = vld [vmem:[%s3356_s4 + $0x1] ss:$0 sm:$0xff]  ;;  %v2838_v57 = vld [vmem:[#allocation3 + $0xc8] sm:$0xff] }
  0xbf   :  { %1110 = vmatpush.bf16.msra.mxu1 %v2855_v36 }
  0xc0   :  { %v476_v56 = vpack.c.bf16 %v447_v53, %v446_v52  ;;  %v451_v6 = vrot.slane %v447_v53, 6  ;;  %v463_v7 = vrot.slane %v447_v53, 7  ;;  %v2847_v52 = vld [vmem:[#allocation3 + $0x110] sm:$0xff] }
  0xc2   :  { %719 = vmatmul.bf16.vlgmr.msrb.gmra.mxu1 %v476_v56  ;;  %v456_v15 = vsel %vm152_vm1, %v450_v10, %v451_v6  ;;  %v468_v16 = vsel %vm173_vm2, %v462_v11, %v463_v7  ;;  %1091 = vmatpush.bf16.msra.mxu0 %v2847_v52 }
  0xc3   :  { %v441_v58 = vpop.f32.mrf.mxu2  ;;  %v405_v59 = vpop.f32.mrf.mxu0  ;;  %1111 = vmatpush.bf16.msra.mxu1 %v2854_v2 }
  0xc4   :  { %v406_v61 = vadd.f32 %v2949_v34, %v405_v59  ;;  %v424_v63 = vpop.f32.mrf.mxu1  ;;  %v442_v1 = vadd.f32 %v441_v58, %v423_v60  ;;  %v2844_v34 = vld [vmem:[#allocation3 + $0xf8] sm:$0xff]  ;;  %v2846_v58 = vld [vmem:[#allocation3 + $0x108] sm:$0xff] }
  0xc5   :  { %1067 = vmatpush.bf16.msrb.mxu3 %v2844_v34 }
  0xc6   :  { %v425_v50 = vadd.f32 %v424_v63, %v406_v61  ;;  %v448_v8 = vmax.f32 %v442_v1, 0.0  ;;  %1092 = vmatpush.bf16.msra.mxu0 %v2846_v58  ;;  %v2837_v61 = vld [vmem:[#allocation3 + $0xc0] sm:$0xff] }
  0xc7   :  { %1112 = vmatpush.bf16.msra.mxu1 %v2853_v41  ;;  %v2845_v63 = vld [vmem:[#allocation3 + $0x100] sm:$0xff] }
  0xc8   :  { %v452_v20 = vrot.slane %v448_v8, 6  ;;  %v464_v21 = vrot.slane %v448_v8, 7 }
  0xc9   :  { %1068 = vmatpush.bf16.msrb.mxu3 %v2843_v37 }
  0xca   :  { %v455_v25 = vsel %vm152_vm1, %v451_v6, %v452_v20  ;;  %v467_v26 = vsel %vm173_vm2, %v463_v7, %v464_v21  ;;  %1093 = vmatpush.bf16.msra.mxu0 %v2845_v63 }
  0xcb   :  { %v443_v4 = vpop.f32.mrf.mxu2  ;;  %1648 = vmatpush.bf16.msrb.mxu1 %v2892_v46 }
  0xcc   :  { %v444_v5 = vadd.f32 %v443_v4, %v425_v50 }
  0xcd   :  { %1069 = vmatpush.bf16.msrb.mxu3 %v2842_v39 }
  0xce   :  { %v449_v9 = vmax.f32 %v444_v5, 0.0 }
  0xd0   :  { %v453_v12 = vrot.slane %v449_v9, 6  ;;  %v465_v13 = vrot.slane %v449_v9, 7  ;;  %v479_v14 = vpack.c.bf16 %v449_v9, %v448_v8 }
  0xd1   :  { %1070 = vmatpush.bf16.msrb.mxu3 %v2841_v42 }
  0xd2   :  { %724 = vmatmul.bf16.gmra.mxu1 %v479_v14  ;;  %v457_v3 = vsel %vm152_vm1, %v453_v12, %v450_v10  ;;  %v469_v17 = vsel %vm173_vm2, %v465_v13, %v462_v11  ;;  %v454_v23 = vsel %vm152_vm1, %v452_v20, %v453_v12  ;;  %v466_v24 = vsel %vm173_vm2, %v464_v21, %v465_v13  ;;  %v2951_v12 = vld [vmem:[%s3356_s4 + $0x2] ss:$0 sm:$0xff] }
  0xd3   :  { %v2282_v18 = vpack.c.bf16 %v456_v15, %v457_v3  ;;  %v2288_v19 = vpack.c.bf16 %v468_v16, %v469_v17  ;;  %v2285_v27 = vpack.c.bf16 %v454_v23, %v455_v25  ;;  %v2291_v29 = vpack.c.bf16 %v466_v24, %v467_v26  ;;  %v808_v59 = vpop.f32.mrf.mxu2 }
  0xd5   :  { %2283 = vmatmul.msk.bf16.vlgmr.msra.gmra.mxu3 %vm3143_vm6, %v2282_v18  ;;  %2289 = vmatmul.msk.bf16.vlgmr.msrb.gmra.mxu0 %vm3148_vm7, %v2288_v19 }
  0xd6   :  { %1071 = vmatpush.bf16.msrb.mxu3 %v2840_v44  ;;  %1390 = vmatpush.bf16.msrb.mxu0 %v2884_v55 }
  0xda   :  { %1072 = vmatpush.bf16.msrb.mxu3 %v2839_v51 }
  0xdb   :  { %v810_v9 = vpop.f32.mrf.mxu2 }
  0xde   :  { %1073 = vmatpush.bf16.msrb.mxu3 %v2838_v57 }
  0xe2   :  { %1074 = vmatpush.bf16.msrb.mxu3 %v2837_v61 }
  0xe3   :  { %v813_v23 = vpop.f32.mrf.mxu2 }
  0xe5   :  { %2286 = vmatmul.msk.bf16.gmra.mxu3 %vm3173_vm10, %v2285_v27  ;;  %2292 = vmatmul.msk.bf16.gmra.mxu0 %vm3178_vm11, %v2291_v29 }
  0xeb   :  { %v815_v34 = vpop.f32.mrf.mxu2 }
 0x13f   :  { %v720_v53 = vpop.f32.mrf.mxu1 }
 0x147   :  { %v722_v4 = vpop.f32.mrf.mxu1 }
 0x14f   :  { %v725_v17 = vpop.f32.mrf.mxu1 }
 0x152   :  { %v701_v47 = vpop.f32.mrf.mxu0 }
 0x157   :  { %v727_v30 = vpop.f32.mrf.mxu1 }
 0x158   :  { %v682_v54 = vpop.f32.mrf.mxu3 }
 0x159   :  { %v683_v56 = vadd.f32 %v2950_v48, %v682_v54 }
 0x15a   :  { %v703_v1 = vpop.f32.mrf.mxu0 }
 0x15b   :  { %v702_v60 = vadd.f32 %v701_v47, %v683_v56  ;;  %v2955_v47 = vld [vmem:[%s3356_s4 + $0x9] ss:$0 sm:$0xff] }
 0x15d   :  { %v721_v50 = vadd.f32 %v720_v53, %v702_v60 }
 0x15f   :  { %v730_v7 = vmax.f32 %v721_v50, 0.0  ;;  %v2882_v50 = vld [vmem:[#allocation6 + $0x1a8] sm:$0xff] }
 0x160   :  { %v684_v5 = vpop.f32.mrf.mxu3 }
 0x161   :  { %v685_v6 = vadd.f32 %v2950_v48, %v684_v5  ;;  %v818_v11 = vadd.f32 %v808_v59, %v730_v7  ;;  %v2880_v5 = vld [vmem:[#allocation6 + $0x198] sm:$0xff] }
 0x162   :  { %v706_v14 = vpop.f32.mrf.mxu0  ;;  %v2876_v7 = vld [vmem:[#allocation6 + $0x178] sm:$0xff] }
 0x163   :  { %v704_v8 = vadd.f32 %v703_v1, %v685_v6  ;;  %v3224_v18 = vadd.f32 %v2951_v12, %v818_v11  ;;  %v2883_v1 = vld [vmem:[#allocation6 + $0x1b0] sm:$0xff]  ;;  %v2868_v6 = vld [vmem:[#allocation6 + $0x138] sm:$0xff]  ;;  %1371 = vmatpush.bf16.msra.mxu3 %v2876_v7  ;;  %v2878_v11 = vld [vmem:[#allocation6 + $0x188] sm:$0xff] }
 0x164   :  { %1391 = vmatpush.bf16.msrb.mxu0 %v2883_v1  ;;  %1352 = vmatpush.bf16.msra.mxu2 %v2868_v6 }
 0x165   :  { %v723_v10 = vadd.f32 %v722_v4, %v704_v8  ;;  %v834_v39 = vrot.slane %v3224_v18, 4  ;;  %v855_v40 = vrot.slane %v3224_v18, 6  ;;  %v2881_v4 = vld [vmem:[#allocation6 + $0x1a0] sm:$0xff]  ;;  %v2879_v8 = vld [vmem:[#allocation6 + $0x190] sm:$0xff] }
 0x167   :  { %v731_v13 = vmax.f32 %v723_v10, 0.0  ;;  %v2875_v10 = vld [vmem:[#allocation6 + $0x170] sm:$0xff] }
 0x168   :  { %v687_v15 = vpop.f32.mrf.mxu3  ;;  %1392 = vmatpush.bf16.msrb.mxu0 %v2882_v50  ;;  %1372 = vmatpush.bf16.msra.mxu3 %v2875_v10 }
 0x169   :  { %v819_v3 = vadd.f32 %v810_v9, %v731_v13  ;;  %v688_v16 = vadd.f32 %v2950_v48, %v687_v15  ;;  %v2867_v9 = vld [vmem:[#allocation6 + $0x130] sm:$0xff]  ;;  %v2874_v13 = vld [vmem:[#allocation6 + $0x168] sm:$0xff]  ;;  %v2865_v15 = vld [vmem:[#allocation6 + $0x120] sm:$0xff] }
 0x16a   :  { %v708_v27 = vpop.f32.mrf.mxu0  ;;  %1353 = vmatpush.bf16.msra.mxu2 %v2867_v9 }
 0x16b   :  { %v3226_v19 = vadd.f32 %v2951_v12, %v819_v3  ;;  %v707_v20 = vadd.f32 %v706_v14, %v688_v16  ;;  %v2877_v14 = vld [vmem:[#allocation6 + $0x180] sm:$0xff]  ;;  %v2864_v16 = vld [vmem:[#allocation6 + $0x118] sm:$0xff] }
 0x16c   :  { %1393 = vmatpush.bf16.msrb.mxu0 %v2881_v4  ;;  %1373 = vmatpush.bf16.msra.mxu3 %v2874_v13  ;;  %v2873_v3 = vld [vmem:[#allocation6 + $0x160] sm:$0xff] }
 0x16d   :  { %v869_v21 = vpack.c.bf16 %v3226_v19, %v3224_v18  ;;  %v726_v24 = vadd.f32 %v725_v17, %v707_v20  ;;  %v835_v36 = vrot.slane %v3226_v19, 4  ;;  %v856_v37 = vrot.slane %v3226_v19, 6  ;;  %v2872_v17 = vld [vmem:[#allocation6 + $0x158] sm:$0xff]  ;;  %v2863_v20 = vld [vmem:[#allocation6 + $0x110] sm:$0xff] }
 0x16f   :  { %1113 = vmatmul.bf16.vlgmr.msra.gmra.mxu1 %v869_v21  ;;  %v732_v29 = vmax.f32 %v726_v24, 0.0  ;;  %v841_v44 = vsel %vm838_vm12, %v834_v39, %v835_v36  ;;  %v861_v28 = vsel %vm152_vm1, %v855_v40, %v856_v37  ;;  %v2871_v21 = vld [vmem:[#allocation6 + $0x150] sm:$0xff]  ;;  %v2862_v24 = vld [vmem:[#allocation6 + $0x108] sm:$0xff] }
 0x170   :  { %v689_v25 = vpop.f32.mrf.mxu3  ;;  %1394 = vmatpush.bf16.msrb.mxu0 %v2880_v5  ;;  %1374 = vmatpush.bf16.msra.mxu3 %v2873_v3 }
 0x171   :  { %v690_v26 = vadd.f32 %v2950_v48, %v689_v25  ;;  %v820_v32 = vadd.f32 %v813_v23, %v732_v29  ;;  %v2870_v25 = vld [vmem:[#allocation6 + $0x148] sm:$0xff] }
 0x173   :  { %v709_v49 = vadd.f32 %v708_v27, %v690_v26  ;;  %v3232_v38 = vadd.f32 %v2951_v12, %v820_v32  ;;  %v2952_v27 = vld [vmem:[%s3356_s4 + $0x4] ss:$0 sm:$0xff] }
 0x174   :  { %1395 = vmatpush.bf16.msrb.mxu0 %v2879_v8  ;;  %1375 = vmatpush.bf16.msra.mxu3 %v2872_v17 }
 0x175   :  { %v728_v31 = vadd.f32 %v727_v30, %v709_v49  ;;  %v836_v53 = vrot.slane %v3232_v38, 4  ;;  %v857_v54 = vrot.slane %v3232_v38, 6  ;;  %v2861_v49 = vld [vmem:[#allocation6 + $0x100] sm:$0xff] }
 0x176   :  { %v2869_v30 = vld [vmem:[#allocation6 + $0x140] sm:$0xff] }
 0x177   :  { %v733_v33 = vmax.f32 %v728_v31, 0.0  ;;  %v840_v58 = vsel %vm838_vm12, %v835_v36, %v836_v53  ;;  %v860_v60 = vsel %vm152_vm1, %v856_v37, %v857_v54 }
 0x178   :  { %1396 = vmatpush.bf16.msrb.mxu0 %v2878_v11  ;;  %1376 = vmatpush.bf16.msra.mxu3 %v2871_v21 }
 0x179   :  { %v821_v35 = vadd.f32 %v815_v34, %v733_v33 }
 0x17b   :  { %v3234_v2 = vadd.f32 %v2951_v12, %v821_v35  ;;  %v2866_v12 = vld [vmem:[#allocation6 + $0x128] sm:$0xff] }
 0x17c   :  { %1354 = vmatpush.bf16.msra.mxu2 %v2866_v12  ;;  %1397 = vmatpush.bf16.msrb.mxu0 %v2877_v14 }
 0x17d   :  { %v837_v41 = vrot.slane %v3234_v2, 4  ;;  %v858_v42 = vrot.slane %v3234_v2, 6  ;;  %v872_v43 = vpack.c.bf16 %v3234_v2, %v3232_v38  ;;  %1377 = vmatpush.bf16.msra.mxu3 %v2870_v25  ;;  %v2908_v25 = vld [vmem:[#allocation3 + $0x238] sm:$0xff] }
 0x17f   :  { %1118 = vmatmul.bf16.gmra.mxu1 %v872_v43  ;;  %v842_v45 = vsel %vm838_vm12, %v837_v41, %v834_v39  ;;  %v862_v48 = vsel %vm152_vm1, %v858_v42, %v855_v40  ;;  %v839_v56 = vsel %vm838_vm12, %v836_v53, %v837_v41  ;;  %v859_v57 = vsel %vm152_vm1, %v857_v54, %v858_v42 }
 0x180   :  { %v2424_v51 = vpack.c.bf16 %v841_v44, %v842_v45  ;;  %v2430_v52 = vpack.c.bf16 %v861_v28, %v862_v48  ;;  %v2427_v61 = vpack.c.bf16 %v839_v56, %v840_v58  ;;  %v2433_v63 = vpack.c.bf16 %v859_v57, %v860_v60  ;;  %1355 = vmatpush.bf16.msra.mxu2 %v2865_v15 }
 0x181   :  { %1378 = vmatpush.bf16.msra.mxu3 %v2869_v30  ;;  %v2906_v30 = vld [vmem:[#allocation3 + $0x228] sm:$0xff] }
 0x182   :  { %2425 = vmatmul.msk.bf16.vlgmr.msrb.gmra.mxu3 %vm3249_vm14, %v2424_v51  ;;  %2431 = vmatmul.msk.bf16.vlgmr.msra.gmra.mxu0 %vm3143_vm6, %v2430_v52 }
 0x184   :  { %1356 = vmatpush.bf16.msra.mxu2 %v2864_v16 }
 0x185   :  { %1686 = vmatpush.bf16.msrb.mxu3 %v2908_v25 }
 0x188   :  { %1357 = vmatpush.bf16.msra.mxu2 %v2863_v20 }
 0x18c   :  { %1358 = vmatpush.bf16.msra.mxu2 %v2862_v24  ;;  %v2891_v24 = vld [vmem:[#allocation3 + $0x1b0] sm:$0xff] }
 0x18d   :  { %1649 = vmatpush.bf16.msrb.mxu1 %v2891_v24 }
 0x190   :  { %1359 = vmatpush.bf16.msra.mxu2 %v2861_v49  ;;  %v2888_v49 = vld [vmem:[#allocation3 + $0x198] sm:$0xff] }
 0x192   :  { %2428 = vmatmul.msk.bf16.gmra.mxu3 %vm3271_vm0, %v2427_v61  ;;  %2434 = vmatmul.msk.bf16.gmra.mxu0 %vm3173_vm10, %v2433_v63 }
 0x1ec   :  { %v1114_v26 = vpop.f32.mrf.mxu1 }
 0x1f4   :  { %v1116_v34 = vpop.f32.mrf.mxu1 }
 0x1fc   :  { %v1119_v28 = vpop.f32.mrf.mxu1 }
 0x1ff   :  { %v1095_v23 = vpop.f32.mrf.mxu0 }
 0x204   :  { %v1121_v58 = vpop.f32.mrf.mxu1 }
 0x205   :  { %v1076_v29 = vpop.f32.mrf.mxu3 }
 0x206   :  { %v1077_v31 = vadd.f32 %v2952_v27, %v1076_v29  ;;  %v2907_v29 = vld [vmem:[#allocation3 + $0x230] sm:$0xff] }
 0x207   :  { %v1097_v32 = vpop.f32.mrf.mxu0  ;;  %1687 = vmatpush.bf16.msrb.mxu3 %v2907_v29 }
 0x208   :  { %v1096_v33 = vadd.f32 %v1095_v23, %v1077_v31  ;;  %v2887_v31 = vld [vmem:[#allocation3 + $0x190] sm:$0xff] }
 0x20a   :  { %v1115_v37 = vadd.f32 %v1114_v26, %v1096_v33  ;;  %v2890_v26 = vld [vmem:[#allocation3 + $0x1a8] sm:$0xff]  ;;  %v2904_v33 = vld [vmem:[#allocation3 + $0x218] sm:$0xff] }
 0x20b   :  { %1650 = vmatpush.bf16.msrb.mxu1 %v2890_v26  ;;  %1688 = vmatpush.bf16.msrb.mxu3 %v2906_v30 }
 0x20c   :  { %v1124_v41 = vmax.f32 %v1115_v37, 0.0  ;;  %v2899_v37 = vld [vmem:[#allocation3 + $0x1f0] sm:$0xff] }
 0x20d   :  { %v1078_v35 = vpop.f32.mrf.mxu3 }
 0x20e   :  { %v1079_v36 = vadd.f32 %v2952_v27, %v1078_v35  ;;  %v1128_v50 = vrot.slane %v1124_v41, 4  ;;  %v1140_v4 = vrot.slane %v1124_v41, 6  ;;  %v2885_v35 = vld [vmem:[#allocation3 + $0x180] sm:$0xff] }
 0x20f   :  { %v1100_v43 = vpop.f32.mrf.mxu0 }
 0x210   :  { %v1098_v39 = vadd.f32 %v1097_v32, %v1079_v36  ;;  %v2905_v32 = vld [vmem:[#allocation3 + $0x220] sm:$0xff]  ;;  %v2903_v36 = vld [vmem:[#allocation3 + $0x210] sm:$0xff] }
 0x211   :  { %1689 = vmatpush.bf16.msrb.mxu3 %v2905_v32 }
 0x212   :  { %v1117_v40 = vadd.f32 %v1116_v34, %v1098_v39  ;;  %v2900_v34 = vld [vmem:[#allocation3 + $0x1f8] sm:$0xff]  ;;  %v2902_v39 = vld [vmem:[#allocation3 + $0x208] sm:$0xff] }
 0x213   :  { %1667 = vmatpush.bf16.msrb.mxu2 %v2900_v34 }
 0x214   :  { %v1125_v42 = vmax.f32 %v1117_v40, 0.0  ;;  %v2898_v40 = vld [vmem:[#allocation3 + $0x1e8] sm:$0xff] }
 0x215   :  { %v1081_v44 = vpop.f32.mrf.mxu3  ;;  %1690 = vmatpush.bf16.msrb.mxu3 %v2904_v33 }
 0x216   :  { %v1154_v45 = vpack.c.bf16 %v1125_v42, %v1124_v41  ;;  %v1082_v48 = vadd.f32 %v2952_v27, %v1081_v44  ;;  %v1129_v61 = vrot.slane %v1125_v42, 4  ;;  %v1141_v63 = vrot.slane %v1125_v42, 6  ;;  %v2901_v41 = vld [vmem:[#allocation3 + $0x200] sm:$0xff]  ;;  %v2896_v44 = vld [vmem:[#allocation3 + $0x1d8] sm:$0xff] }
 0x217   :  { %v1102_v54 = vpop.f32.mrf.mxu0  ;;  %1668 = vmatpush.bf16.msrb.mxu2 %v2899_v37  ;;  %v2897_v42 = vld [vmem:[#allocation3 + $0x1e0] sm:$0xff] }
 0x218   :  { %1398 = vmatmul.bf16.vlgmr.msrb.gmra.mxu0 %v1154_v45  ;;  %v1101_v51 = vadd.f32 %v1100_v43, %v1082_v48  ;;  %v1134_v8 = vsel %vm838_vm12, %v1128_v50, %v1129_v61  ;;  %v1146_v10 = vsel %vm152_vm1, %v1140_v4, %v1141_v63  ;;  %v2940_v43 = vld [vmem:[#allocation6 + $0x2f8] sm:$0xff]  ;;  %v2939_v45 = vld [vmem:[#allocation6 + $0x2f0] sm:$0xff]  ;;  %v2938_v48 = vld [vmem:[#allocation6 + $0x2e8] sm:$0xff] }
 0x219   :  { %1691 = vmatpush.bf16.msrb.mxu3 %v2903_v36 }
 0x21a   :  { %v1120_v56 = vadd.f32 %v1119_v28, %v1101_v51  ;;  %v2895_v28 = vld [vmem:[#allocation3 + $0x1d0] sm:$0xff] }
 0x21b   :  { %1669 = vmatpush.bf16.msrb.mxu2 %v2898_v40 }
 0x21c   :  { %v1126_v55 = vmax.f32 %v1120_v56, 0.0 }
 0x21d   :  { %v1083_v52 = vpop.f32.mrf.mxu3  ;;  %1692 = vmatpush.bf16.msrb.mxu3 %v2902_v39 }
 0x21e   :  { %v1084_v53 = vadd.f32 %v2952_v27, %v1083_v52  ;;  %v1130_v14 = vrot.slane %v1126_v55, 4  ;;  %v1142_v15 = vrot.slane %v1126_v55, 6  ;;  %v2889_v27 = vld [vmem:[#allocation3 + $0x1a0] sm:$0xff] }
 0x21f   :  { %1651 = vmatpush.bf16.msrb.mxu1 %v2889_v27  ;;  %1670 = vmatpush.bf16.msrb.mxu2 %v2897_v42  ;;  %v2953_v52 = vld [vmem:[%s3356_s4 + $0x5] ss:$0 sm:$0xff]  ;;  %v2916_v42 = vld [vmem:[#allocation6 + $0x238] sm:$0xff] }
 0x220   :  { %v1103_v57 = vadd.f32 %v1102_v54, %v1084_v53  ;;  %v1133_v17 = vsel %vm838_vm12, %v1129_v61, %v1130_v14  ;;  %v1145_v20 = vsel %vm152_vm1, %v1141_v63, %v1142_v15  ;;  %v2894_v53 = vld [vmem:[#allocation3 + $0x1c8] sm:$0xff]  ;;  %v2937_v54 = vld [vmem:[#allocation6 + $0x2e0] sm:$0xff]  ;;  %v2936_v63 = vld [vmem:[#allocation6 + $0x2d8] sm:$0xff]  ;;  %1989 = vmatpush.bf16.msra.mxu0 %v2916_v42 }
 0x221   :  { %1693 = vmatpush.bf16.msrb.mxu3 %v2901_v41 }
 0x222   :  { %v1122_v60 = vadd.f32 %v1121_v58, %v1103_v57 }
 0x223   :  { %1652 = vmatpush.bf16.msrb.mxu1 %v2888_v49  ;;  %1671 = vmatpush.bf16.msrb.mxu2 %v2896_v44  ;;  %v2914_v44 = vld [vmem:[#allocation6 + $0x228] sm:$0xff] }
 0x224   :  { %v1127_v1 = vmax.f32 %v1122_v60, 0.0  ;;  %v2893_v60 = vld [vmem:[#allocation3 + $0x1c0] sm:$0xff] }
 0x226   :  { %v1131_v5 = vrot.slane %v1127_v1, 4  ;;  %v1143_v6 = vrot.slane %v1127_v1, 6  ;;  %v1157_v7 = vpack.c.bf16 %v1127_v1, %v1126_v55 }
 0x227   :  { %1653 = vmatpush.bf16.msrb.mxu1 %v2887_v31  ;;  %1672 = vmatpush.bf16.msrb.mxu2 %v2895_v28  ;;  %v2913_v28 = vld [vmem:[#allocation6 + $0x220] sm:$0xff] }
 0x228   :  { %1403 = vmatmul.bf16.gmra.mxu0 %v1157_v7  ;;  %v1135_v9 = vsel %vm838_vm12, %v1131_v5, %v1128_v50  ;;  %v1147_v11 = vsel %vm152_vm1, %v1143_v6, %v1140_v4  ;;  %v1132_v3 = vsel %vm838_vm12, %v1130_v14, %v1131_v5  ;;  %v1144_v16 = vsel %vm152_vm1, %v1142_v15, %v1143_v6  ;;  %v2935_v6 = vld [vmem:[#allocation6 + $0x2d0] sm:$0xff] }
 0x229   :  { %v2532_v12 = vpack.c.bf16 %v1134_v8, %v1135_v9  ;;  %v2538_v13 = vpack.c.bf16 %v1146_v10, %v1147_v11  ;;  %v2535_v21 = vpack.c.bf16 %v1132_v3, %v1133_v17  ;;  %v2541_v23 = vpack.c.bf16 %v1144_v16, %v1145_v20  ;;  %v2934_v9 = vld [vmem:[#allocation6 + $0x2c8] sm:$0xff] }
 0x22b   :  { %2533 = vmatmul.msk.bf16.vlgmr.msra.gmra.mxu2 %vm3249_vm14, %v2532_v12  ;;  %2539 = vmatmul.msk.bf16.vlgmr.msra.gmra.mxu3 %vm3143_vm6, %v2538_v13  ;;  %v2933_v13 = vld [vmem:[#allocation6 + $0x2c0] sm:$0xff] }
 0x22c   :  { %1654 = vmatpush.bf16.msrb.mxu1 %v2886_v62  ;;  %2040 = vmatpush.bf16.msra.mxu3 %v2940_v43  ;;  %v2915_v43 = vld [vmem:[#allocation6 + $0x230] sm:$0xff] }
 0x22d   :  { %1673 = vmatpush.bf16.msrb.mxu2 %v2894_v53  ;;  %1990 = vmatpush.bf16.msra.mxu0 %v2915_v43  ;;  %v2911_v53 = vld [vmem:[#allocation6 + $0x210] sm:$0xff] }
 0x230   :  { %1655 = vmatpush.bf16.msrb.mxu1 %v2885_v35  ;;  %2041 = vmatpush.bf16.msra.mxu3 %v2939_v45  ;;  %v2932_v45 = vld [vmem:[#allocation6 + $0x2b8] sm:$0xff] }
 0x231   :  { %1674 = vmatpush.bf16.msrb.mxu2 %v2893_v60  ;;  %1991 = vmatpush.bf16.msra.mxu0 %v2914_v44  ;;  %v2909_v60 = vld [vmem:[#allocation6 + $0x200] sm:$0xff] }
 0x234   :  { %2042 = vmatpush.bf16.msra.mxu3 %v2938_v48  ;;  %v2931_v48 = vld [vmem:[#allocation6 + $0x2b0] sm:$0xff] }
 0x235   :  { %2023 = vmatpush.bf16.msra.mxu2 %v2932_v45  ;;  %1992 = vmatpush.bf16.msra.mxu0 %v2913_v28 }
 0x238   :  { %2043 = vmatpush.bf16.msra.mxu3 %v2937_v54  ;;  %v2929_v54 = vld [vmem:[#allocation6 + $0x2a0] sm:$0xff] }
 0x239   :  { %2024 = vmatpush.bf16.msra.mxu2 %v2931_v48 }
 0x23b   :  { %2536 = vmatmul.msk.bf16.gmra.mxu2 %vm3271_vm0, %v2535_v21  ;;  %2542 = vmatmul.msk.bf16.gmra.mxu3 %vm3173_vm10, %v2541_v23 }
 0x23c   :  { %2044 = vmatpush.bf16.msra.mxu3 %v2936_v63  ;;  %v2923_v63 = vld [vmem:[#allocation6 + $0x270] sm:$0xff] }
 0x240   :  { %2045 = vmatpush.bf16.msra.mxu3 %v2935_v6  ;;  %v2920_v6 = vld [vmem:[#allocation6 + $0x258] sm:$0xff] }
 0x244   :  { %2046 = vmatpush.bf16.msra.mxu3 %v2934_v9  ;;  %v2919_v9 = vld [vmem:[#allocation6 + $0x250] sm:$0xff] }
 0x248   :  { %2047 = vmatpush.bf16.msra.mxu3 %v2933_v13 }
 0x295   :  { %v1399_v51 = vpop.f32.mrf.mxu0 }
 0x29d   :  { %v1401_v1 = vpop.f32.mrf.mxu0 }
 0x2a5   :  { %v1404_v20 = vpop.f32.mrf.mxu0 }
 0x2ad   :  { %v1406_v30 = vpop.f32.mrf.mxu0 }
 0x2ae   :  { %v1361_v56 = vpop.f32.mrf.mxu2  ;;  %v1380_v57 = vpop.f32.mrf.mxu3 }
 0x2af   :  { %v1362_v58 = vadd.f32 %v2953_v52, %v1361_v56  ;;  %v2910_v56 = vld [vmem:[#allocation6 + $0x208] sm:$0xff] }
 0x2b1   :  { %v1381_v61 = vadd.f32 %v1380_v57, %v1362_v58  ;;  %v2928_v57 = vld [vmem:[#allocation6 + $0x298] sm:$0xff] }
 0x2b2   :  { %v2924_v58 = vld [vmem:[#allocation6 + $0x278] sm:$0xff] }
 0x2b3   :  { %v1400_v55 = vadd.f32 %v1399_v51, %v1381_v61  ;;  %v2912_v51 = vld [vmem:[#allocation6 + $0x218] sm:$0xff]  ;;  %v2927_v61 = vld [vmem:[#allocation6 + $0x290] sm:$0xff]  ;;  %2006 = vmatpush.bf16.msra.mxu1 %v2924_v58 }
 0x2b4   :  { %1993 = vmatpush.bf16.msra.mxu0 %v2912_v51 }
 0x2b5   :  { %v1409_v50 = vmax.f32 %v1400_v55, 0.0  ;;  %v2926_v55 = vld [vmem:[#allocation6 + $0x288] sm:$0xff] }
 0x2b6   :  { %v1363_v4 = vpop.f32.mrf.mxu2  ;;  %v1382_v5 = vpop.f32.mrf.mxu3 }
 0x2b7   :  { %v1413_v7 = vadd.f32 %v1409_v50, %v3224_v18  ;;  %v1364_v8 = vadd.f32 %v2953_v52, %v1363_v4  ;;  %2007 = vmatpush.bf16.msra.mxu1 %v2923_v63  ;;  %v2925_v50 = vld [vmem:[#allocation6 + $0x280] sm:$0xff] }
 0x2b8   :  { %1994 = vmatpush.bf16.msra.mxu0 %v2911_v53 }
 0x2b9   :  { %v1383_v10 = vadd.f32 %v1382_v5, %v1364_v8  ;;  %v1448_v11 = vpack.c.bf16 %v1413_v7, %v3063_v0  ;;  %v1436_v33 = vrot.slane %v1413_v7, 4  ;;  %v2921_v5 = vld [vmem:[#allocation6 + $0x260] sm:$0xff] }
 0x2bb   :  { %v1402_v12 = vadd.f32 %v1401_v1, %v1383_v10  ;;  %1656 = vmatmul.bf16.vlgmr.msrb.gmra.mxu1 %v1448_v11  ;;  %v2922_v1 = vld [vmem:[#allocation6 + $0x268] sm:$0xff] }
 0x2bc   :  { %1995 = vmatpush.bf16.msra.mxu0 %v2910_v56  ;;  %2008 = vmatpush.bf16.msra.mxu1 %v2922_v1  ;;  %v2954_v10 = vld [vmem:[%s3356_s4 + $0x8] ss:$0 sm:$0xff] }
 0x2bd   :  { %v1410_v14 = vmax.f32 %v1402_v12, 0.0  ;;  %v2918_v11 = vld [vmem:[#allocation6 + $0x248] sm:$0xff] }
 0x2be   :  { %v1366_v15 = vpop.f32.mrf.mxu2  ;;  %v1385_v3 = vpop.f32.mrf.mxu3 }
 0x2bf   :  { %v1414_v16 = vadd.f32 %v1410_v14, %v3226_v19  ;;  %v1367_v17 = vadd.f32 %v2953_v52, %v1366_v15  ;;  %v2917_v14 = vld [vmem:[#allocation6 + $0x240] sm:$0xff] }
 0x2c0   :  { %1996 = vmatpush.bf16.msra.mxu0 %v2909_v60  ;;  %2009 = vmatpush.bf16.msra.mxu1 %v2921_v5 }
 0x2c1   :  { %v1450_v21 = vpack.c.bf16 %v1414_v16, %v1413_v7  ;;  %v1386_v18 = vadd.f32 %v1385_v3, %v1367_v17  ;;  %v1437_v32 = vrot.slane %v1414_v16, 4 }
 0x2c3   :  { %v1405_v23 = vadd.f32 %v1404_v20, %v1386_v18  ;;  %1694 = vmatmul.bf16.vlgmr.msrb.gmra.mxu3 %v1450_v21  ;;  %v1442_v36 = vsel %vm838_vm12, %v1436_v33, %v1437_v32 }
 0x2c4   :  { %2010 = vmatpush.bf16.msra.mxu1 %v2920_v6 }
 0x2c5   :  { %v1411_v46 = vmax.f32 %v1405_v23, 0.0 }
 0x2c6   :  { %v1368_v24 = vpop.f32.mrf.mxu2  ;;  %v1387_v27 = vpop.f32.mrf.mxu3 }
 0x2c7   :  { %v1415_v25 = vadd.f32 %v1411_v46, %v3232_v38  ;;  %v1369_v26 = vadd.f32 %v2953_v52, %v1368_v24  ;;  %v2930_v52 = vld [vmem:[#allocation6 + $0x2a8] sm:$0xff] }
 0x2c8   :  { %2025 = vmatpush.bf16.msra.mxu2 %v2930_v52  ;;  %2011 = vmatpush.bf16.msra.mxu1 %v2919_v9 }
 0x2c9   :  { %v1388_v29 = vadd.f32 %v1387_v27, %v1369_v26  ;;  %v1451_v49 = vpack.c.bf16 %v1415_v25, %v3063_v0  ;;  %v1438_v39 = vrot.slane %v1415_v25, 4 }
 0x2cb   :  { %v1407_v31 = vadd.f32 %v1406_v30, %v1388_v29  ;;  %1661 = vmatmul.bf16.gmra.mxu1 %v1451_v49 }
 0x2cc   :  { %2026 = vmatpush.bf16.msra.mxu2 %v2929_v54  ;;  %2012 = vmatpush.bf16.msra.mxu1 %v2918_v11 }
 0x2cd   :  { %v1412_v19 = vmax.f32 %v1407_v31, 0.0 }
 0x2cf   :  { %v1416_v62 = vadd.f32 %v1412_v19, %v3234_v2  ;;  %v1441_v2 = vsel %vm838_vm12, %v1437_v32, %v1438_v39 }
 0x2d0   :  { %2027 = vmatpush.bf16.msra.mxu2 %v2928_v57  ;;  %2013 = vmatpush.bf16.msra.mxu1 %v2917_v14 }
 0x2d1   :  { %v1439_v34 = vrot.slane %v1416_v62, 4  ;;  %v1453_v35 = vpack.c.bf16 %v1416_v62, %v1415_v25 }
 0x2d3   :  { %v1443_v38 = vsel %vm838_vm12, %v1439_v34, %v1436_v33  ;;  %1699 = vmatmul.bf16.gmra.mxu3 %v1453_v35  ;;  %v1440_v40 = vsel %vm838_vm12, %v1438_v39, %v1439_v34 }
 0x2d4   :  { %v2642_v37 = vpack.c.bf16 %v1442_v36, %v1443_v38  ;;  %v2645_v41 = vpack.c.bf16 %v1440_v40, %v1441_v2  ;;  %2028 = vmatpush.bf16.msra.mxu2 %v2927_v61 }
 0x2d6   :  { %2643 = vmatmul.msk.bf16.vlgmr.msrb.gmra.mxu2 %vm3249_vm14, %v2642_v37 }
 0x2d8   :  { %2029 = vmatpush.bf16.msra.mxu2 %v2926_v55 }
 0x2dc   :  { %2030 = vmatpush.bf16.msra.mxu2 %v2925_v50 }
 0x2e3   :  { %2048 = vmatmul.bf16.vlgmr.msra.gmra.mxu3 %v1450_v21 }
 0x2e6   :  { %2646 = vmatmul.msk.bf16.gmra.mxu2 %vm3271_vm0, %v2645_v41 }
 0x2f3   :  { %2052 = vmatmul.bf16.gmra.mxu3 %v1453_v35 }
 0x338   :  { %v1657_v8 = vpop.f32.mrf.mxu1 }
 0x339   :  { %v1658_v13 = vadd.f32 %v2954_v10, %v1657_v8 }
 0x340   :  { %v1659_v15 = vpop.f32.mrf.mxu1 }
 0x341   :  { %v1660_v18 = vadd.f32 %v2954_v10, %v1659_v15 }
 0x346   :  { %v1695_v4 = vpop.f32.mrf.mxu3 }
 0x348   :  { %v1662_v25 = vpop.f32.mrf.mxu1 }
 0x349   :  { %v1663_v49 = vadd.f32 %v2954_v10, %v1662_v25 }
 0x34e   :  { %v1697_v7 = vpop.f32.mrf.mxu3 }
 0x350   :  { %v1664_v62 = vpop.f32.mrf.mxu1 }
 0x351   :  { %v1665_v35 = vadd.f32 %v2954_v10, %v1664_v62 }
 0x356   :  { %v1700_v12 = vpop.f32.mrf.mxu3 }
 0x359   :  { %v1676_v3 = vpop.f32.mrf.mxu2 }
 0x35a   :  { %v1677_v16 = vadd.f32 %v1676_v3, %v1658_v13 }
 0x35c   :  { %v1696_v17 = vadd.f32 %v1695_v4, %v1677_v16 }
 0x35e   :  { %v1705_v20 = vmax.f32 %v1696_v17, 0.0  ;;  %v1702_v21 = vpop.f32.mrf.mxu3 }
 0x360   :  { %v1725_v23 = vpack.c.bf16 %v1705_v20, %v3063_v0  ;;  %v1713_v42 = vrot.slane %v1705_v20, 4 }
 0x361   :  { %v1678_v46 = vpop.f32.mrf.mxu2 }
 0x362   :  { %v1679_v24 = vadd.f32 %v1678_v46, %v1660_v18  ;;  %1997 = vmatmul.bf16.vlgmr.msra.gmra.mxu0 %v1725_v23 }
 0x364   :  { %v1698_v26 = vadd.f32 %v1697_v7, %v1679_v24 }
 0x366   :  { %v1706_v27 = vmax.f32 %v1698_v26, 0.0  ;;  %v2049_v29 = vpop.f32.mrf.mxu3 }
 0x368   :  { %v1727_v30 = vpack.c.bf16 %v1706_v27, %v1705_v20  ;;  %v1714_v40 = vrot.slane %v1706_v27, 4 }
 0x369   :  { %v1681_v31 = vpop.f32.mrf.mxu2 }
 0x36a   :  { %v1682_v19 = vadd.f32 %v1681_v31, %v1663_v49  ;;  %2031 = vmatmul.bf16.vlgmr.msra.gmra.mxu2 %v1727_v30  ;;  %v1719_v45 = vsel %vm838_vm12, %v1713_v42, %v1714_v40 }
 0x36c   :  { %v1701_v32 = vadd.f32 %v1700_v12, %v1682_v19 }
 0x36e   :  { %v1707_v33 = vmax.f32 %v1701_v32, 0.0  ;;  %v2050_v34 = vpop.f32.mrf.mxu3 }
 0x370   :  { %v1728_v36 = vpack.c.bf16 %v1707_v33, %v3063_v0  ;;  %v1715_v0 = vrot.slane %v1707_v33, 4 }
 0x371   :  { %v1683_v38 = vpop.f32.mrf.mxu2 }
 0x372   :  { %v1684_v37 = vadd.f32 %v1683_v38, %v1665_v35  ;;  %2001 = vmatmul.bf16.gmra.mxu0 %v1728_v36  ;;  %v1718_v52 = vsel %vm838_vm12, %v1714_v40, %v1715_v0 }
 0x374   :  { %v1703_v39 = vadd.f32 %v1702_v21, %v1684_v37 }
 0x376   :  { %v1708_v2 = vmax.f32 %v1703_v39, 0.0  ;;  %v2053_v41 = vpop.f32.mrf.mxu3 }
 0x378   :  { %v1716_v43 = vrot.slane %v1708_v2, 4  ;;  %v1730_v44 = vpack.c.bf16 %v1708_v2, %v1707_v33 }
 0x37a   :  { %v1720_v28 = vsel %vm838_vm12, %v1716_v43, %v1713_v42  ;;  %2035 = vmatmul.bf16.gmra.mxu2 %v1730_v44  ;;  %v1717_v51 = vsel %vm838_vm12, %v1715_v0, %v1716_v43 }
 0x37b   :  { %v2776_v48 = vpack.c.bf16 %v1719_v45, %v1720_v28  ;;  %v2779_v53 = vpack.c.bf16 %v1717_v51, %v1718_v52 }
 0x37d   :  { %2777 = vmatmul.msk.bf16.vlgmr.msra.gmra.mxu1 %vm3249_vm14, %v2776_v48 }
 0x37e   :  { %v2054_v11 = vpop.f32.mrf.mxu3 }
 0x38d   :  { %2780 = vmatmul.msk.bf16.gmra.mxu1 %vm3271_vm0, %v2779_v53 }
 0x3df   :  { %v1998_v54 = vpop.f32.mrf.mxu0 }
 0x3e7   :  { %v1999_v56 = vpop.f32.mrf.mxu0 }
 0x3e8   :  { %v2000_v55 = vadd.f32 %v2955_v47, %v1999_v56 }
 0x3ed   :  { %v2032_v57 = vpop.f32.mrf.mxu2 }
 0x3ef   :  { %v2002_v58 = vpop.f32.mrf.mxu0 }
 0x3f5   :  { %v2033_v60 = vpop.f32.mrf.mxu2 }
 0x3f7   :  { %v2003_v59 = vpop.f32.mrf.mxu0 }
 0x3f8   :  { %v2004_v6 = vadd.f32 %v2955_v47, %v2003_v59 }
 0x3fa   :  { %v2015_v61 = vpop.f32.mrf.mxu1 }
 0x3fd   :  { %v2036_v63 = vpop.f32.mrf.mxu2 }
 0x402   :  { %v2016_v1 = vpop.f32.mrf.mxu1 }
 0x403   :  { %v2017_v50 = vadd.f32 %v2016_v1, %v2000_v55 }
 0x405   :  { %v2034_v22 = vadd.f32 %v2033_v60, %v2017_v50  ;;  %v2037_v9 = vpop.f32.mrf.mxu2 }
 0x407   :  { %v2051_v4 = vadd.f32 %v2050_v34, %v2034_v22 }
 0x409   :  { %2057 = vst [vmem:[#allocation9 - $0x4] sm:$0xf0] %v2051_v4 }
 0x40a   :  { %v2019_v5 = vpop.f32.mrf.mxu1 }
 0x412   :  { %v2020_v7 = vpop.f32.mrf.mxu1 }
 0x413   :  { %v2021_v8 = vadd.f32 %v2020_v7, %v2004_v6 }
 0x415   :  { %v2038_v10 = vadd.f32 %v2037_v9, %v2021_v8 }
 0x417   :  { %v2055_v12 = vadd.f32 %v2054_v11, %v2038_v10 }
 0x419   :  { %2058 = vst [vmem:[#allocation9] sm:$0xf0] %v2055_v12 }
 0x41a   :  { %2069 = dma.vmem_to_hbm [thread:$0]  %s2065_s29, 128, %s2067_s7, [#allocation5]  }
 0x41b   :  { %3056 = dma.done.wait [#allocation5], 128  }
 0x41c   :  { %3057 = vsyncadd [#allocation5], 4294967168 }
 0x41d   :  { %2074 = vsyncpa [#allocation4], 1 }
 0x41e   :  { %2075 = vsyncpa [#allocation7], 1 }
 0x41f   :  { %2076 = vsyncpa [#allocation5], 1 }

</bundles_post_ra>
